<compile_context>
chip_gen: v6e
topology: v6e:2x2x1
jax: 0.10.0
libtpu: 0.0.40
codegen_flags: <defaults>
</compile_context>

<pallas_src>
import numpy as np
import jax
import jax.numpy as jnp
from jax.experimental import pallas as pl
from jax.experimental.pallas import tpu as pltpu


# ------------------------------- Pallas kernel -------------------------------

def _lenet_kernel(x_ref, w1b_ref, b1_ref, w2b_ref, b2_ref,
                  wf1_ref, bf1_ref, wf2_ref, bf2_ref, wf3_ref, bf3_ref,
                  o_ref, p1_ref):
    # x_ref block: (1, 32, 96) = one image, rows = H, lanes = W*Cin (Cin=3)
    xn = x_ref[0]                                          # (32, 96)

    # ---- conv1 (3->6, k=5) + bias + relu : (28, 28*6=168) --------------------
    acc1 = jnp.zeros((28, 168), jnp.float32)
    for kh in range(5):
        acc1 = acc1 + jnp.dot(xn[kh:kh + 28, :], w1b_ref[kh],
                              preferred_element_type=jnp.float32)
    v1 = jnp.maximum(acc1 + b1_ref[...], 0.0)              # (28, 168)

    # ---- pool1 2x2: W via shifted-lane max (stays dilated), H via row pairs --
    mw1 = jnp.maximum(v1[:, :162], v1[:, 6:])              # (28, 162)
    for hp in range(14):
        p1_ref[pl.ds(hp, 1), :] = jnp.maximum(mw1[2 * hp:2 * hp + 1, :],
                                              mw1[2 * hp + 1:2 * hp + 2, :])

    # ---- conv2 (6->16, k=5) + bias + relu : (10, 10*16=160) ------------------
    acc2 = jnp.zeros((10, 160), jnp.float32)
    for kh in range(5):
        acc2 = acc2 + jnp.dot(p1_ref[pl.ds(kh, 10), :], w2b_ref[kh],
                              preferred_element_type=jnp.float32)
    v2 = jnp.maximum(acc2 + b2_ref[...], 0.0)              # (10, 160)

    # ---- pool2 2x2 -----------------------------------------------------------
    mw2 = jnp.maximum(v2[:, :144], v2[:, 16:])             # (10, 144)
    rows = [jnp.maximum(mw2[2 * h:2 * h + 1, :], mw2[2 * h + 1:2 * h + 2, :])
            for h in range(5)]                             # 5 x (1, 144)

    # ---- fc1 (torch channel-major flatten folded into wf1) + relu ------------
    y = bf1_ref[...]                                       # (1, 120)
    for h in range(5):
        y = y + jnp.dot(rows[h], wf1_ref[h], preferred_element_type=jnp.float32)
    y = jnp.maximum(y, 0.0)

    # ---- fc2 + relu, fc3 (output padded to 128 lanes) ------------------------
    y = jnp.maximum(jnp.dot(y, wf2_ref[...], preferred_element_type=jnp.float32)
                    + bf2_ref[...], 0.0)                   # (1, 84)
    y = jnp.dot(y, wf3_ref[...], preferred_element_type=jnp.float32) + bf3_ref[...]
    o_ref[0] = y                                           # (1, 128)


# --------------------- one-time host-side weight preparation -----------------

def _banded(w_oihw, w_out, lane_stride, n_rows):
    """Block-Toeplitz matrix per kh: rows index the (W*Cin) lanes of the input
    row, cols index (w_out*Cout).  out[kh, (wo+kw)*stride + c, wo*O + o] = w."""
    O, C, K, _ = w_oihw.shape
    out = np.zeros((K, n_rows, w_out * O), np.float32)
    for kh in range(K):
        for kw in range(K):
            blk = w_oihw[:, :, kh, kw].T                   # (C, O)
            for wo in range(w_out):
                j0 = (wo + kw) * lane_stride
                out[kh, j0:j0 + C, wo * O:(wo + 1) * O] = blk
    return out


def prepare_params(p):
    """Build the kernel-layout weights once (runs eagerly, outside the kernel)."""
    w1 = np.asarray(p["w1"], np.float32); b1 = np.asarray(p["b1"], np.float32)
    w2 = np.asarray(p["w2"], np.float32); b2 = np.asarray(p["b2"], np.float32)
    wf1 = np.asarray(p["w_fc1"], np.float32); bf1 = np.asarray(p["b_fc1"], np.float32)
    wf2 = np.asarray(p["w_fc2"], np.float32); bf2 = np.asarray(p["b_fc2"], np.float32)
    wf3 = np.asarray(p["w_fc3"], np.float32); bf3 = np.asarray(p["b_fc3"], np.float32)

    w1b = _banded(w1, 28, 3, 96)       # (5, 96, 168)   input lanes: w*3 + c
    w2b = _banded(w2, 10, 12, 162)     # (5, 162, 160)  dilated lanes: 2*w*6 + c

    # fc1: fold torch flatten (c*25 + h*5 + w) and the dilated pool2 layout
    # (lane = 32*w + c) into per-h weight slabs.
    wf1b = np.zeros((5, 144, 120), np.float32)
    for h in range(5):
        for w in range(5):
            for o in range(16):
                wf1b[h, 32 * w + o, :] = wf1[:, o * 25 + h * 5 + w]

    return {
        "w1b": jnp.asarray(w1b),
        "b1r": jnp.asarray(np.tile(b1, 28).reshape(1, 168)),
        "w2b": jnp.asarray(w2b),
        "b2r": jnp.asarray(np.tile(b2, 10).reshape(1, 160)),
        "wf1b": jnp.asarray(wf1b),
        "bf1r": jnp.asarray(bf1.reshape(1, 120)),
        "wf2t": jnp.asarray(wf2.T.copy()),                                  # (120, 84)
        "bf2r": jnp.asarray(bf2.reshape(1, 84)),
        "wf3t": jnp.asarray(np.pad(wf3.T, ((0, 0), (0, 118)))),             # (84, 128)
        "bf3r": jnp.asarray(np.pad(bf3, (0, 118)).reshape(1, 128)),
    }


# --------------------------------- forward -----------------------------------

def forward(x_nchw, pp):
    N, C, H, W = x_nchw.shape
    assert (C, H, W) == (3, 32, 32), "LeNet forward expects (N, 3, 32, 32)"
    x = jnp.transpose(x_nchw, (0, 2, 3, 1)).reshape(N, 32, 96)   # rows=H, lanes=W*C

    out = pl.pallas_call(
        _lenet_kernel,
        out_shape=jax.ShapeDtypeStruct((N, 1, 128), jnp.float32),
        grid=(N,),
        in_specs=[
            pl.BlockSpec((1, 32, 96),   lambda n: (n, 0, 0)),
            pl.BlockSpec((5, 96, 168),  lambda n: (0, 0, 0)),
            pl.BlockSpec((1, 168),      lambda n: (0, 0)),
            pl.BlockSpec((5, 162, 160), lambda n: (0, 0, 0)),
            pl.BlockSpec((1, 160),      lambda n: (0, 0)),
            pl.BlockSpec((5, 144, 120), lambda n: (0, 0, 0)),
            pl.BlockSpec((1, 120),      lambda n: (0, 0)),
            pl.BlockSpec((120, 84),     lambda n: (0, 0)),
            pl.BlockSpec((1, 84),       lambda n: (0, 0)),
            pl.BlockSpec((84, 128),     lambda n: (0, 0)),
            pl.BlockSpec((1, 128),      lambda n: (0, 0)),
        ],
        out_specs=pl.BlockSpec((1, 1, 128), lambda n: (n, 0, 0)),
        scratch_shapes=[pltpu.VMEM((14, 162), jnp.float32)],
        compiler_params=pltpu.CompilerParams(
            dimension_semantics=("parallel",)),
    )(x, pp["w1b"], pp["b1r"], pp["w2b"], pp["b2r"],
      pp["wf1b"], pp["bf1r"], pp["wf2t"], pp["bf2r"], pp["wf3t"], pp["bf3r"])

    return out[:, 0, :10]


# ---------------------------- pure-JAX reference ------------------------------

def reference(x, p):
    def conv(x, w, b):
        y = jax.lax.conv_general_dilated(
            x, w, (1, 1), "VALID", dimension_numbers=("NCHW", "OIHW", "NCHW"))
        return y + b.reshape(1, -1, 1, 1)

    def pool(x):
        N, C, H, W = x.shape
        return jnp.max(x.reshape(N, C, H // 2, 2, W // 2, 2), axis=(3, 5))

    x = pool(jax.nn.relu(conv(x, p["w1"], p["b1"])))
    x = pool(jax.nn.relu(conv(x, p["w2"], p["b2"])))
    x = x.reshape(x.shape[0], -1)
    x = jax.nn.relu(x @ p["w_fc1"].T + p["b_fc1"])
    x = jax.nn.relu(x @ p["w_fc2"].T + p["b_fc2"])
    return x @ p["w_fc3"].T + p["b_fc3"]


# ----------------------------------- main -------------------------------------

if __name__ == "__main__":
    key = jax.random.PRNGKey(0)
    ks = jax.random.split(key, 12)

    params = {
        "w1": 0.1 * jax.random.normal(ks[0], (6, 3, 5, 5), jnp.float32),
        "b1": 0.1 * jax.random.normal(ks[1], (6,), jnp.float32),
        "w2": 0.1 * jax.random.normal(ks[2], (16, 6, 5, 5), jnp.float32),
        "b2": 0.1 * jax.random.normal(ks[3], (16,), jnp.float32),
        "w_fc1": 0.1 * jax.random.normal(ks[4], (120, 400), jnp.float32),
        "b_fc1": 0.1 * jax.random.normal(ks[5], (120,), jnp.float32),
        "w_fc2": 0.1 * jax.random.normal(ks[6], (84, 120), jnp.float32),
        "b_fc2": 0.1 * jax.random.normal(ks[7], (84,), jnp.float32),
        "w_fc3": 0.1 * jax.random.normal(ks[8], (10, 84), jnp.float32),
        "b_fc3": 0.1 * jax.random.normal(ks[9], (10,), jnp.float32),
    }

    # LeNet forward requires 32x32 input so the flatten yields 16*5*5.
    x = jax.random.normal(ks[10], (2, 3, 32, 32), jnp.float32)

    pp = prepare_params(params)          # one-time host-side weight re-layout
    fwd = jax.jit(forward)

    out = jax.block_until_ready(fwd(x, pp))
    ref = jax.block_until_ready(reference(x, params))

    assert out.shape == (2, 10), out.shape
    assert jnp.allclose(out, ref, rtol=1e-4, atol=1e-4), "mismatch vs reference"

    print("KERNEL_OK")
</pallas_src>

<mosaic_0001>
module attributes {stable_mosaic.version = 11 : i64} {
  func.func @_lenet_kernel(%arg0: i32, %arg1: memref<1x32x96xf32, #tpu.memory_space<vmem>>, %arg2: memref<5x96x168xf32, #tpu.memory_space<vmem>>, %arg3: memref<1x168xf32, #tpu.memory_space<vmem>>, %arg4: memref<5x162x160xf32, #tpu.memory_space<vmem>>, %arg5: memref<1x160xf32, #tpu.memory_space<vmem>>, %arg6: memref<5x144x120xf32, #tpu.memory_space<vmem>>, %arg7: memref<1x120xf32, #tpu.memory_space<vmem>>, %arg8: memref<120x84xf32, #tpu.memory_space<vmem>>, %arg9: memref<1x84xf32, #tpu.memory_space<vmem>>, %arg10: memref<84x128xf32, #tpu.memory_space<vmem>>, %arg11: memref<1x128xf32, #tpu.memory_space<vmem>>, %arg12: memref<1x1x128xf32, #tpu.memory_space<vmem>>, %arg13: memref<14x162xf32, #tpu.memory_space<vmem>>) attributes {dimension_semantics = [#tpu.dimension_semantics<parallel>], iteration_bounds = array<i64: 2>, scalar_prefetch = 0 : i64, scratch_operands = 1 : i64, tpu.core_type = #tpu.core_type<tc>, window_params = [{transform_indices = @transform_0, window_bounds = array<i64: 1, 32, 96>}, {pipeline_mode = #tpu.pipeline_mode<synchronous>, transform_indices = @transform_1, window_bounds = array<i64: 5, 96, 168>}, {pipeline_mode = #tpu.pipeline_mode<synchronous>, transform_indices = @transform_2, window_bounds = array<i64: 1, 168>}, {pipeline_mode = #tpu.pipeline_mode<synchronous>, transform_indices = @transform_3, window_bounds = array<i64: 5, 162, 160>}, {pipeline_mode = #tpu.pipeline_mode<synchronous>, transform_indices = @transform_4, window_bounds = array<i64: 1, 160>}, {pipeline_mode = #tpu.pipeline_mode<synchronous>, transform_indices = @transform_5, window_bounds = array<i64: 5, 144, 120>}, {pipeline_mode = #tpu.pipeline_mode<synchronous>, transform_indices = @transform_6, window_bounds = array<i64: 1, 120>}, {pipeline_mode = #tpu.pipeline_mode<synchronous>, transform_indices = @transform_7, window_bounds = array<i64: 120, 84>}, {pipeline_mode = #tpu.pipeline_mode<synchronous>, transform_indices = @transform_8, window_bounds = array<i64: 1, 84>}, {pipeline_mode = #tpu.pipeline_mode<synchronous>, transform_indices = @transform_9, window_bounds = array<i64: 84, 128>}, {pipeline_mode = #tpu.pipeline_mode<synchronous>, transform_indices = @transform_10, window_bounds = array<i64: 1, 128>}, {transform_indices = @transform_11, window_bounds = array<i64: 1, 1, 128>}]} {
    %c0 = arith.constant 0 : index
    %c0_0 = arith.constant 0 : index
    %c0_1 = arith.constant 0 : index
    %0 = vector.load %arg1[%c0, %c0_0, %c0_1] : memref<1x32x96xf32, #tpu.memory_space<vmem>>, vector<1x32x96xf32>
    %1 = vector.shape_cast %0 : vector<1x32x96xf32> to vector<32x96xf32>
    %cst = arith.constant 0.000000e+00 : f32
    %2 = vector.broadcast %cst : f32 to vector<28x168xf32>
    %3 = vector.extract_strided_slice %1 {offsets = [0, 0], sizes = [28, 96], strides = [1, 1]} : vector<32x96xf32> to vector<28x96xf32>
    %c0_2 = arith.constant 0 : index
    %c0_3 = arith.constant 0 : index
    %c0_4 = arith.constant 0 : index
    %4 = vector.load %arg2[%c0_2, %c0_3, %c0_4] : memref<5x96x168xf32, #tpu.memory_space<vmem>>, vector<1x96x168xf32>
    %5 = vector.shape_cast %4 : vector<1x96x168xf32> to vector<96x168xf32>
    %cst_5 = arith.constant dense<0.000000e+00> : vector<28x168xf32>
    %6 = tpu.matmul %3, %5, %cst_5 {dimension_numbers = #tpu.dot_dimension_numbers<[1], [0], [0], [1], [0, 0, 1, 1], [], []>} : vector<28x96xf32>, vector<96x168xf32>, vector<28x168xf32> -> vector<28x168xf32>
    %7 = arith.addf %2, %6 : vector<28x168xf32>
    %8 = vector.extract_strided_slice %1 {offsets = [1, 0], sizes = [28, 96], strides = [1, 1]} : vector<32x96xf32> to vector<28x96xf32>
    %c1 = arith.constant 1 : index
    %c0_6 = arith.constant 0 : index
    %c0_7 = arith.constant 0 : index
    %9 = vector.load %arg2[%c1, %c0_6, %c0_7] : memref<5x96x168xf32, #tpu.memory_space<vmem>>, vector<1x96x168xf32>
    %10 = vector.shape_cast %9 : vector<1x96x168xf32> to vector<96x168xf32>
    %cst_8 = arith.constant dense<0.000000e+00> : vector<28x168xf32>
    %11 = tpu.matmul %8, %10, %cst_8 {dimension_numbers = #tpu.dot_dimension_numbers<[1], [0], [0], [1], [0, 0, 1, 1], [], []>} : vector<28x96xf32>, vector<96x168xf32>, vector<28x168xf32> -> vector<28x168xf32>
    %12 = arith.addf %7, %11 : vector<28x168xf32>
    %13 = vector.extract_strided_slice %1 {offsets = [2, 0], sizes = [28, 96], strides = [1, 1]} : vector<32x96xf32> to vector<28x96xf32>
    %c2 = arith.constant 2 : index
    %c0_9 = arith.constant 0 : index
    %c0_10 = arith.constant 0 : index
    %14 = vector.load %arg2[%c2, %c0_9, %c0_10] : memref<5x96x168xf32, #tpu.memory_space<vmem>>, vector<1x96x168xf32>
    %15 = vector.shape_cast %14 : vector<1x96x168xf32> to vector<96x168xf32>
    %cst_11 = arith.constant dense<0.000000e+00> : vector<28x168xf32>
    %16 = tpu.matmul %13, %15, %cst_11 {dimension_numbers = #tpu.dot_dimension_numbers<[1], [0], [0], [1], [0, 0, 1, 1], [], []>} : vector<28x96xf32>, vector<96x168xf32>, vector<28x168xf32> -> vector<28x168xf32>
    %17 = arith.addf %12, %16 : vector<28x168xf32>
    %18 = vector.extract_strided_slice %1 {offsets = [3, 0], sizes = [28, 96], strides = [1, 1]} : vector<32x96xf32> to vector<28x96xf32>
    %c3 = arith.constant 3 : index
    %c0_12 = arith.constant 0 : index
    %c0_13 = arith.constant 0 : index
    %19 = vector.load %arg2[%c3, %c0_12, %c0_13] : memref<5x96x168xf32, #tpu.memory_space<vmem>>, vector<1x96x168xf32>
    %20 = vector.shape_cast %19 : vector<1x96x168xf32> to vector<96x168xf32>
    %cst_14 = arith.constant dense<0.000000e+00> : vector<28x168xf32>
    %21 = tpu.matmul %18, %20, %cst_14 {dimension_numbers = #tpu.dot_dimension_numbers<[1], [0], [0], [1], [0, 0, 1, 1], [], []>} : vector<28x96xf32>, vector<96x168xf32>, vector<28x168xf32> -> vector<28x168xf32>
    %22 = arith.addf %17, %21 : vector<28x168xf32>
    %23 = vector.extract_strided_slice %1 {offsets = [4, 0], sizes = [28, 96], strides = [1, 1]} : vector<32x96xf32> to vector<28x96xf32>
    %c4 = arith.constant 4 : index
    %c0_15 = arith.constant 0 : index
    %c0_16 = arith.constant 0 : index
    %24 = vector.load %arg2[%c4, %c0_15, %c0_16] : memref<5x96x168xf32, #tpu.memory_space<vmem>>, vector<1x96x168xf32>
    %25 = vector.shape_cast %24 : vector<1x96x168xf32> to vector<96x168xf32>
    %cst_17 = arith.constant dense<0.000000e+00> : vector<28x168xf32>
    %26 = tpu.matmul %23, %25, %cst_17 {dimension_numbers = #tpu.dot_dimension_numbers<[1], [0], [0], [1], [0, 0, 1, 1], [], []>} : vector<28x96xf32>, vector<96x168xf32>, vector<28x168xf32> -> vector<28x168xf32>
    %27 = arith.addf %22, %26 : vector<28x168xf32>
    %c0_18 = arith.constant 0 : index
    %c0_19 = arith.constant 0 : index
    %28 = vector.load %arg3[%c0_18, %c0_19] : memref<1x168xf32, #tpu.memory_space<vmem>>, vector<1x168xf32>
    %29 = vector.broadcast %28 : vector<1x168xf32> to vector<28x168xf32>
    %30 = arith.addf %27, %29 : vector<28x168xf32>
    %cst_20 = arith.constant 0.000000e+00 : f32
    %31 = vector.broadcast %cst_20 : f32 to vector<28x168xf32>
    %32 = arith.maximumf %30, %31 : vector<28x168xf32>
    %33 = vector.extract_strided_slice %32 {offsets = [0, 0], sizes = [28, 162], strides = [1, 1]} : vector<28x168xf32> to vector<28x162xf32>
    %34 = vector.extract_strided_slice %32 {offsets = [0, 6], sizes = [28, 162], strides = [1, 1]} : vector<28x168xf32> to vector<28x162xf32>
    %35 = arith.maximumf %33, %34 : vector<28x162xf32>
    %36 = vector.extract_strided_slice %35 {offsets = [0, 0], sizes = [1, 162], strides = [1, 1]} : vector<28x162xf32> to vector<1x162xf32>
    %37 = vector.extract_strided_slice %35 {offsets = [1, 0], sizes = [1, 162], strides = [1, 1]} : vector<28x162xf32> to vector<1x162xf32>
    %38 = arith.maximumf %36, %37 : vector<1x162xf32>
    %c0_21 = arith.constant 0 : index
    %c0_22 = arith.constant 0 : index
    %39 = vector.load %arg13[%c0_21, %c0_22] : memref<14x162xf32, #tpu.memory_space<vmem>>, vector<1x162xf32>
    tpu.vector_store %arg13[%c0_21, %c0_22], %38 {strides = array<i32>} : memref<14x162xf32, #tpu.memory_space<vmem>>, vector<1x162xf32>,
    %40 = vector.extract_strided_slice %35 {offsets = [2, 0], sizes = [1, 162], strides = [1, 1]} : vector<28x162xf32> to vector<1x162xf32>
    %41 = vector.extract_strided_slice %35 {offsets = [3, 0], sizes = [1, 162], strides = [1, 1]} : vector<28x162xf32> to vector<1x162xf32>
    %42 = arith.maximumf %40, %41 : vector<1x162xf32>
    %c1_23 = arith.constant 1 : index
    %c0_24 = arith.constant 0 : index
    %43 = vector.load %arg13[%c1_23, %c0_24] : memref<14x162xf32, #tpu.memory_space<vmem>>, vector<1x162xf32>
    tpu.vector_store %arg13[%c1_23, %c0_24], %42 {strides = array<i32>} : memref<14x162xf32, #tpu.memory_space<vmem>>, vector<1x162xf32>,
    %44 = vector.extract_strided_slice %35 {offsets = [4, 0], sizes = [1, 162], strides = [1, 1]} : vector<28x162xf32> to vector<1x162xf32>
    %45 = vector.extract_strided_slice %35 {offsets = [5, 0], sizes = [1, 162], strides = [1, 1]} : vector<28x162xf32> to vector<1x162xf32>
    %46 = arith.maximumf %44, %45 : vector<1x162xf32>
    %c2_25 = arith.constant 2 : index
    %c0_26 = arith.constant 0 : index
    %47 = vector.load %arg13[%c2_25, %c0_26] : memref<14x162xf32, #tpu.memory_space<vmem>>, vector<1x162xf32>
    tpu.vector_store %arg13[%c2_25, %c0_26], %46 {strides = array<i32>} : memref<14x162xf32, #tpu.memory_space<vmem>>, vector<1x162xf32>,
    %48 = vector.extract_strided_slice %35 {offsets = [6, 0], sizes = [1, 162], strides = [1, 1]} : vector<28x162xf32> to vector<1x162xf32>
    %49 = vector.extract_strided_slice %35 {offsets = [7, 0], sizes = [1, 162], strides = [1, 1]} : vector<28x162xf32> to vector<1x162xf32>
    %50 = arith.maximumf %48, %49 : vector<1x162xf32>
    %c3_27 = arith.constant 3 : index
    %c0_28 = arith.constant 0 : index
    %51 = vector.load %arg13[%c3_27, %c0_28] : memref<14x162xf32, #tpu.memory_space<vmem>>, vector<1x162xf32>
    tpu.vector_store %arg13[%c3_27, %c0_28], %50 {strides = array<i32>} : memref<14x162xf32, #tpu.memory_space<vmem>>, vector<1x162xf32>,
    %52 = vector.extract_strided_slice %35 {offsets = [8, 0], sizes = [1, 162], strides = [1, 1]} : vector<28x162xf32> to vector<1x162xf32>
    %53 = vector.extract_strided_slice %35 {offsets = [9, 0], sizes = [1, 162], strides = [1, 1]} : vector<28x162xf32> to vector<1x162xf32>
    %54 = arith.maximumf %52, %53 : vector<1x162xf32>
    %c4_29 = arith.constant 4 : index
    %c0_30 = arith.constant 0 : index
    %55 = vector.load %arg13[%c4_29, %c0_30] : memref<14x162xf32, #tpu.memory_space<vmem>>, vector<1x162xf32>
    tpu.vector_store %arg13[%c4_29, %c0_30], %54 {strides = array<i32>} : memref<14x162xf32, #tpu.memory_space<vmem>>, vector<1x162xf32>,
    %56 = vector.extract_strided_slice %35 {offsets = [10, 0], sizes = [1, 162], strides = [1, 1]} : vector<28x162xf32> to vector<1x162xf32>
    %57 = vector.extract_strided_slice %35 {offsets = [11, 0], sizes = [1, 162], strides = [1, 1]} : vector<28x162xf32> to vector<1x162xf32>
    %58 = arith.maximumf %56, %57 : vector<1x162xf32>
    %c5 = arith.constant 5 : index
    %c0_31 = arith.constant 0 : index
    %59 = vector.load %arg13[%c5, %c0_31] : memref<14x162xf32, #tpu.memory_space<vmem>>, vector<1x162xf32>
    tpu.vector_store %arg13[%c5, %c0_31], %58 {strides = array<i32>} : memref<14x162xf32, #tpu.memory_space<vmem>>, vector<1x162xf32>,
    %60 = vector.extract_strided_slice %35 {offsets = [12, 0], sizes = [1, 162], strides = [1, 1]} : vector<28x162xf32> to vector<1x162xf32>
    %61 = vector.extract_strided_slice %35 {offsets = [13, 0], sizes = [1, 162], strides = [1, 1]} : vector<28x162xf32> to vector<1x162xf32>
    %62 = arith.maximumf %60, %61 : vector<1x162xf32>
    %c6 = arith.constant 6 : index
    %c0_32 = arith.constant 0 : index
    %63 = vector.load %arg13[%c6, %c0_32] : memref<14x162xf32, #tpu.memory_space<vmem>>, vector<1x162xf32>
    tpu.vector_store %arg13[%c6, %c0_32], %62 {strides = array<i32>} : memref<14x162xf32, #tpu.memory_space<vmem>>, vector<1x162xf32>,
    %64 = vector.extract_strided_slice %35 {offsets = [14, 0], sizes = [1, 162], strides = [1, 1]} : vector<28x162xf32> to vector<1x162xf32>
    %65 = vector.extract_strided_slice %35 {offsets = [15, 0], sizes = [1, 162], strides = [1, 1]} : vector<28x162xf32> to vector<1x162xf32>
    %66 = arith.maximumf %64, %65 : vector<1x162xf32>
    %c7 = arith.constant 7 : index
    %c0_33 = arith.constant 0 : index
    %67 = vector.load %arg13[%c7, %c0_33] : memref<14x162xf32, #tpu.memory_space<vmem>>, vector<1x162xf32>
    tpu.vector_store %arg13[%c7, %c0_33], %66 {strides = array<i32>} : memref<14x162xf32, #tpu.memory_space<vmem>>, vector<1x162xf32>,
    %68 = vector.extract_strided_slice %35 {offsets = [16, 0], sizes = [1, 162], strides = [1, 1]} : vector<28x162xf32> to vector<1x162xf32>
    %69 = vector.extract_strided_slice %35 {offsets = [17, 0], sizes = [1, 162], strides = [1, 1]} : vector<28x162xf32> to vector<1x162xf32>
    %70 = arith.maximumf %68, %69 : vector<1x162xf32>
    %c8 = arith.constant 8 : index
    %c0_34 = arith.constant 0 : index
    %71 = vector.load %arg13[%c8, %c0_34] : memref<14x162xf32, #tpu.memory_space<vmem>>, vector<1x162xf32>
    tpu.vector_store %arg13[%c8, %c0_34], %70 {strides = array<i32>} : memref<14x162xf32, #tpu.memory_space<vmem>>, vector<1x162xf32>,
    %72 = vector.extract_strided_slice %35 {offsets = [18, 0], sizes = [1, 162], strides = [1, 1]} : vector<28x162xf32> to vector<1x162xf32>
    %73 = vector.extract_strided_slice %35 {offsets = [19, 0], sizes = [1, 162], strides = [1, 1]} : vector<28x162xf32> to vector<1x162xf32>
    %74 = arith.maximumf %72, %73 : vector<1x162xf32>
    %c9 = arith.constant 9 : index
    %c0_35 = arith.constant 0 : index
    %75 = vector.load %arg13[%c9, %c0_35] : memref<14x162xf32, #tpu.memory_space<vmem>>, vector<1x162xf32>
    tpu.vector_store %arg13[%c9, %c0_35], %74 {strides = array<i32>} : memref<14x162xf32, #tpu.memory_space<vmem>>, vector<1x162xf32>,
    %76 = vector.extract_strided_slice %35 {offsets = [20, 0], sizes = [1, 162], strides = [1, 1]} : vector<28x162xf32> to vector<1x162xf32>
    %77 = vector.extract_strided_slice %35 {offsets = [21, 0], sizes = [1, 162], strides = [1, 1]} : vector<28x162xf32> to vector<1x162xf32>
    %78 = arith.maximumf %76, %77 : vector<1x162xf32>
    %c10 = arith.constant 10 : index
    %c0_36 = arith.constant 0 : index
    %79 = vector.load %arg13[%c10, %c0_36] : memref<14x162xf32, #tpu.memory_space<vmem>>, vector<1x162xf32>
    tpu.vector_store %arg13[%c10, %c0_36], %78 {strides = array<i32>} : memref<14x162xf32, #tpu.memory_space<vmem>>, vector<1x162xf32>,
    %80 = vector.extract_strided_slice %35 {offsets = [22, 0], sizes = [1, 162], strides = [1, 1]} : vector<28x162xf32> to vector<1x162xf32>
    %81 = vector.extract_strided_slice %35 {offsets = [23, 0], sizes = [1, 162], strides = [1, 1]} : vector<28x162xf32> to vector<1x162xf32>
    %82 = arith.maximumf %80, %81 : vector<1x162xf32>
    %c11 = arith.constant 11 : index
    %c0_37 = arith.constant 0 : index
    %83 = vector.load %arg13[%c11, %c0_37] : memref<14x162xf32, #tpu.memory_space<vmem>>, vector<1x162xf32>
    tpu.vector_store %arg13[%c11, %c0_37], %82 {strides = array<i32>} : memref<14x162xf32, #tpu.memory_space<vmem>>, vector<1x162xf32>,
    %84 = vector.extract_strided_slice %35 {offsets = [24, 0], sizes = [1, 162], strides = [1, 1]} : vector<28x162xf32> to vector<1x162xf32>
    %85 = vector.extract_strided_slice %35 {offsets = [25, 0], sizes = [1, 162], strides = [1, 1]} : vector<28x162xf32> to vector<1x162xf32>
    %86 = arith.maximumf %84, %85 : vector<1x162xf32>
    %c12 = arith.constant 12 : index
    %c0_38 = arith.constant 0 : index
    %87 = vector.load %arg13[%c12, %c0_38] : memref<14x162xf32, #tpu.memory_space<vmem>>, vector<1x162xf32>
    tpu.vector_store %arg13[%c12, %c0_38], %86 {strides = array<i32>} : memref<14x162xf32, #tpu.memory_space<vmem>>, vector<1x162xf32>,
    %88 = vector.extract_strided_slice %35 {offsets = [26, 0], sizes = [1, 162], strides = [1, 1]} : vector<28x162xf32> to vector<1x162xf32>
    %89 = vector.extract_strided_slice %35 {offsets = [27, 0], sizes = [1, 162], strides = [1, 1]} : vector<28x162xf32> to vector<1x162xf32>
    %90 = arith.maximumf %88, %89 : vector<1x162xf32>
    %c13 = arith.constant 13 : index
    %c0_39 = arith.constant 0 : index
    %91 = vector.load %arg13[%c13, %c0_39] : memref<14x162xf32, #tpu.memory_space<vmem>>, vector<1x162xf32>
    tpu.vector_store %arg13[%c13, %c0_39], %90 {strides = array<i32>} : memref<14x162xf32, #tpu.memory_space<vmem>>, vector<1x162xf32>,
    %cst_40 = arith.constant 0.000000e+00 : f32
    %92 = vector.broadcast %cst_40 : f32 to vector<10x160xf32>
    %c0_41 = arith.constant 0 : index
    %c0_42 = arith.constant 0 : index
    %93 = vector.load %arg13[%c0_41, %c0_42] : memref<14x162xf32, #tpu.memory_space<vmem>>, vector<10x162xf32>
    %c0_43 = arith.constant 0 : index
    %c0_44 = arith.constant 0 : index
    %c0_45 = arith.constant 0 : index
    %94 = vector.load %arg4[%c0_43, %c0_44, %c0_45] : memref<5x162x160xf32, #tpu.memory_space<vmem>>, vector<1x162x160xf32>
    %95 = vector.shape_cast %94 : vector<1x162x160xf32> to vector<162x160xf32>
    %cst_46 = arith.constant dense<0.000000e+00> : vector<10x160xf32>
    %96 = tpu.matmul %93, %95, %cst_46 {dimension_numbers = #tpu.dot_dimension_numbers<[1], [0], [0], [1], [0, 0, 1, 1], [], []>} : vector<10x162xf32>, vector<162x160xf32>, vector<10x160xf32> -> vector<10x160xf32>
    %97 = arith.addf %92, %96 : vector<10x160xf32>
    %c1_47 = arith.constant 1 : index
    %c0_48 = arith.constant 0 : index
    %98 = vector.load %arg13[%c1_47, %c0_48] : memref<14x162xf32, #tpu.memory_space<vmem>>, vector<10x162xf32>
    %c1_49 = arith.constant 1 : index
    %c0_50 = arith.constant 0 : index
    %c0_51 = arith.constant 0 : index
    %99 = vector.load %arg4[%c1_49, %c0_50, %c0_51] : memref<5x162x160xf32, #tpu.memory_space<vmem>>, vector<1x162x160xf32>
    %100 = vector.shape_cast %99 : vector<1x162x160xf32> to vector<162x160xf32>
    %cst_52 = arith.constant dense<0.000000e+00> : vector<10x160xf32>
    %101 = tpu.matmul %98, %100, %cst_52 {dimension_numbers = #tpu.dot_dimension_numbers<[1], [0], [0], [1], [0, 0, 1, 1], [], []>} : vector<10x162xf32>, vector<162x160xf32>, vector<10x160xf32> -> vector<10x160xf32>
    %102 = arith.addf %97, %101 : vector<10x160xf32>
    %c2_53 = arith.constant 2 : index
    %c0_54 = arith.constant 0 : index
    %103 = vector.load %arg13[%c2_53, %c0_54] : memref<14x162xf32, #tpu.memory_space<vmem>>, vector<10x162xf32>
    %c2_55 = arith.constant 2 : index
    %c0_56 = arith.constant 0 : index
    %c0_57 = arith.constant 0 : index
    %104 = vector.load %arg4[%c2_55, %c0_56, %c0_57] : memref<5x162x160xf32, #tpu.memory_space<vmem>>, vector<1x162x160xf32>
    %105 = vector.shape_cast %104 : vector<1x162x160xf32> to vector<162x160xf32>
    %cst_58 = arith.constant dense<0.000000e+00> : vector<10x160xf32>
    %106 = tpu.matmul %103, %105, %cst_58 {dimension_numbers = #tpu.dot_dimension_numbers<[1], [0], [0], [1], [0, 0, 1, 1], [], []>} : vector<10x162xf32>, vector<162x160xf32>, vector<10x160xf32> -> vector<10x160xf32>
    %107 = arith.addf %102, %106 : vector<10x160xf32>
    %c3_59 = arith.constant 3 : index
    %c0_60 = arith.constant 0 : index
    %108 = vector.load %arg13[%c3_59, %c0_60] : memref<14x162xf32, #tpu.memory_space<vmem>>, vector<10x162xf32>
    %c3_61 = arith.constant 3 : index
    %c0_62 = arith.constant 0 : index
    %c0_63 = arith.constant 0 : index
    %109 = vector.load %arg4[%c3_61, %c0_62, %c0_63] : memref<5x162x160xf32, #tpu.memory_space<vmem>>, vector<1x162x160xf32>
    %110 = vector.shape_cast %109 : vector<1x162x160xf32> to vector<162x160xf32>
    %cst_64 = arith.constant dense<0.000000e+00> : vector<10x160xf32>
    %111 = tpu.matmul %108, %110, %cst_64 {dimension_numbers = #tpu.dot_dimension_numbers<[1], [0], [0], [1], [0, 0, 1, 1], [], []>} : vector<10x162xf32>, vector<162x160xf32>, vector<10x160xf32> -> vector<10x160xf32>
    %112 = arith.addf %107, %111 : vector<10x160xf32>
    %c4_65 = arith.constant 4 : index
    %c0_66 = arith.constant 0 : index
    %113 = vector.load %arg13[%c4_65, %c0_66] : memref<14x162xf32, #tpu.memory_space<vmem>>, vector<10x162xf32>
    %c4_67 = arith.constant 4 : index
    %c0_68 = arith.constant 0 : index
    %c0_69 = arith.constant 0 : index
    %114 = vector.load %arg4[%c4_67, %c0_68, %c0_69] : memref<5x162x160xf32, #tpu.memory_space<vmem>>, vector<1x162x160xf32>
    %115 = vector.shape_cast %114 : vector<1x162x160xf32> to vector<162x160xf32>
    %cst_70 = arith.constant dense<0.000000e+00> : vector<10x160xf32>
    %116 = tpu.matmul %113, %115, %cst_70 {dimension_numbers = #tpu.dot_dimension_numbers<[1], [0], [0], [1], [0, 0, 1, 1], [], []>} : vector<10x162xf32>, vector<162x160xf32>, vector<10x160xf32> -> vector<10x160xf32>
    %117 = arith.addf %112, %116 : vector<10x160xf32>
    %c0_71 = arith.constant 0 : index
    %c0_72 = arith.constant 0 : index
    %118 = vector.load %arg5[%c0_71, %c0_72] : memref<1x160xf32, #tpu.memory_space<vmem>>, vector<1x160xf32>
    %119 = vector.broadcast %118 : vector<1x160xf32> to vector<10x160xf32>
    %120 = arith.addf %117, %119 : vector<10x160xf32>
    %cst_73 = arith.constant 0.000000e+00 : f32
    %121 = vector.broadcast %cst_73 : f32 to vector<10x160xf32>
    %122 = arith.maximumf %120, %121 : vector<10x160xf32>
    %123 = vector.extract_strided_slice %122 {offsets = [0, 0], sizes = [10, 144], strides = [1, 1]} : vector<10x160xf32> to vector<10x144xf32>
    %124 = vector.extract_strided_slice %122 {offsets = [0, 16], sizes = [10, 144], strides = [1, 1]} : vector<10x160xf32> to vector<10x144xf32>
    %125 = arith.maximumf %123, %124 : vector<10x144xf32>
    %126 = vector.extract_strided_slice %125 {offsets = [0, 0], sizes = [1, 144], strides = [1, 1]} : vector<10x144xf32> to vector<1x144xf32>
    %127 = vector.extract_strided_slice %125 {offsets = [1, 0], sizes = [1, 144], strides = [1, 1]} : vector<10x144xf32> to vector<1x144xf32>
    %128 = arith.maximumf %126, %127 : vector<1x144xf32>
    %129 = vector.extract_strided_slice %125 {offsets = [2, 0], sizes = [1, 144], strides = [1, 1]} : vector<10x144xf32> to vector<1x144xf32>
    %130 = vector.extract_strided_slice %125 {offsets = [3, 0], sizes = [1, 144], strides = [1, 1]} : vector<10x144xf32> to vector<1x144xf32>
    %131 = arith.maximumf %129, %130 : vector<1x144xf32>
    %132 = vector.extract_strided_slice %125 {offsets = [4, 0], sizes = [1, 144], strides = [1, 1]} : vector<10x144xf32> to vector<1x144xf32>
    %133 = vector.extract_strided_slice %125 {offsets = [5, 0], sizes = [1, 144], strides = [1, 1]} : vector<10x144xf32> to vector<1x144xf32>
    %134 = arith.maximumf %132, %133 : vector<1x144xf32>
    %135 = vector.extract_strided_slice %125 {offsets = [6, 0], sizes = [1, 144], strides = [1, 1]} : vector<10x144xf32> to vector<1x144xf32>
    %136 = vector.extract_strided_slice %125 {offsets = [7, 0], sizes = [1, 144], strides = [1, 1]} : vector<10x144xf32> to vector<1x144xf32>
    %137 = arith.maximumf %135, %136 : vector<1x144xf32>
    %138 = vector.extract_strided_slice %125 {offsets = [8, 0], sizes = [1, 144], strides = [1, 1]} : vector<10x144xf32> to vector<1x144xf32>
    %139 = vector.extract_strided_slice %125 {offsets = [9, 0], sizes = [1, 144], strides = [1, 1]} : vector<10x144xf32> to vector<1x144xf32>
    %140 = arith.maximumf %138, %139 : vector<1x144xf32>
    %c0_74 = arith.constant 0 : index
    %c0_75 = arith.constant 0 : index
    %141 = vector.load %arg7[%c0_74, %c0_75] : memref<1x120xf32, #tpu.memory_space<vmem>>, vector<1x120xf32>
    %c0_76 = arith.constant 0 : index
    %c0_77 = arith.constant 0 : index
    %c0_78 = arith.constant 0 : index
    %142 = vector.load %arg6[%c0_76, %c0_77, %c0_78] : memref<5x144x120xf32, #tpu.memory_space<vmem>>, vector<1x144x120xf32>
    %143 = vector.shape_cast %142 : vector<1x144x120xf32> to vector<144x120xf32>
    %cst_79 = arith.constant dense<0.000000e+00> : vector<1x120xf32>
    %144 = tpu.matmul %128, %143, %cst_79 {dimension_numbers = #tpu.dot_dimension_numbers<[1], [0], [0], [1], [0, 0, 1, 1], [], []>} : vector<1x144xf32>, vector<144x120xf32>, vector<1x120xf32> -> vector<1x120xf32>
    %145 = arith.addf %141, %144 : vector<1x120xf32>
    %c1_80 = arith.constant 1 : index
    %c0_81 = arith.constant 0 : index
    %c0_82 = arith.constant 0 : index
    %146 = vector.load %arg6[%c1_80, %c0_81, %c0_82] : memref<5x144x120xf32, #tpu.memory_space<vmem>>, vector<1x144x120xf32>
    %147 = vector.shape_cast %146 : vector<1x144x120xf32> to vector<144x120xf32>
    %cst_83 = arith.constant dense<0.000000e+00> : vector<1x120xf32>
    %148 = tpu.matmul %131, %147, %cst_83 {dimension_numbers = #tpu.dot_dimension_numbers<[1], [0], [0], [1], [0, 0, 1, 1], [], []>} : vector<1x144xf32>, vector<144x120xf32>, vector<1x120xf32> -> vector<1x120xf32>
    %149 = arith.addf %145, %148 : vector<1x120xf32>
    %c2_84 = arith.constant 2 : index
    %c0_85 = arith.constant 0 : index
    %c0_86 = arith.constant 0 : index
    %150 = vector.load %arg6[%c2_84, %c0_85, %c0_86] : memref<5x144x120xf32, #tpu.memory_space<vmem>>, vector<1x144x120xf32>
    %151 = vector.shape_cast %150 : vector<1x144x120xf32> to vector<144x120xf32>
    %cst_87 = arith.constant dense<0.000000e+00> : vector<1x120xf32>
    %152 = tpu.matmul %134, %151, %cst_87 {dimension_numbers = #tpu.dot_dimension_numbers<[1], [0], [0], [1], [0, 0, 1, 1], [], []>} : vector<1x144xf32>, vector<144x120xf32>, vector<1x120xf32> -> vector<1x120xf32>
    %153 = arith.addf %149, %152 : vector<1x120xf32>
    %c3_88 = arith.constant 3 : index
    %c0_89 = arith.constant 0 : index
    %c0_90 = arith.constant 0 : index
    %154 = vector.load %arg6[%c3_88, %c0_89, %c0_90] : memref<5x144x120xf32, #tpu.memory_space<vmem>>, vector<1x144x120xf32>
    %155 = vector.shape_cast %154 : vector<1x144x120xf32> to vector<144x120xf32>
    %cst_91 = arith.constant dense<0.000000e+00> : vector<1x120xf32>
    %156 = tpu.matmul %137, %155, %cst_91 {dimension_numbers = #tpu.dot_dimension_numbers<[1], [0], [0], [1], [0, 0, 1, 1], [], []>} : vector<1x144xf32>, vector<144x120xf32>, vector<1x120xf32> -> vector<1x120xf32>
    %157 = arith.addf %153, %156 : vector<1x120xf32>
    %c4_92 = arith.constant 4 : index
    %c0_93 = arith.constant 0 : index
    %c0_94 = arith.constant 0 : index
    %158 = vector.load %arg6[%c4_92, %c0_93, %c0_94] : memref<5x144x120xf32, #tpu.memory_space<vmem>>, vector<1x144x120xf32>
    %159 = vector.shape_cast %158 : vector<1x144x120xf32> to vector<144x120xf32>
    %cst_95 = arith.constant dense<0.000000e+00> : vector<1x120xf32>
    %160 = tpu.matmul %140, %159, %cst_95 {dimension_numbers = #tpu.dot_dimension_numbers<[1], [0], [0], [1], [0, 0, 1, 1], [], []>} : vector<1x144xf32>, vector<144x120xf32>, vector<1x120xf32> -> vector<1x120xf32>
    %161 = arith.addf %157, %160 : vector<1x120xf32>
    %cst_96 = arith.constant 0.000000e+00 : f32
    %162 = vector.broadcast %cst_96 : f32 to vector<1x120xf32>
    %163 = arith.maximumf %161, %162 : vector<1x120xf32>
    %c0_97 = arith.constant 0 : index
    %c0_98 = arith.constant 0 : index
    %164 = vector.load %arg8[%c0_97, %c0_98] : memref<120x84xf32, #tpu.memory_space<vmem>>, vector<120x84xf32>
    %cst_99 = arith.constant dense<0.000000e+00> : vector<1x84xf32>
    %165 = tpu.matmul %163, %164, %cst_99 {dimension_numbers = #tpu.dot_dimension_numbers<[1], [0], [0], [1], [0, 0, 1, 1], [], []>} : vector<1x120xf32>, vector<120x84xf32>, vector<1x84xf32> -> vector<1x84xf32>
    %c0_100 = arith.constant 0 : index
    %c0_101 = arith.constant 0 : index
    %166 = vector.load %arg9[%c0_100, %c0_101] : memref<1x84xf32, #tpu.memory_space<vmem>>, vector<1x84xf32>
    %167 = arith.addf %165, %166 : vector<1x84xf32>
    %cst_102 = arith.constant 0.000000e+00 : f32
    %168 = vector.broadcast %cst_102 : f32 to vector<1x84xf32>
    %169 = arith.maximumf %167, %168 : vector<1x84xf32>
    %c0_103 = arith.constant 0 : index
    %c0_104 = arith.constant 0 : index
    %170 = vector.load %arg10[%c0_103, %c0_104] : memref<84x128xf32, #tpu.memory_space<vmem>>, vector<84x128xf32>
    %cst_105 = arith.constant dense<0.000000e+00> : vector<1x128xf32>
    %171 = tpu.matmul %169, %170, %cst_105 {dimension_numbers = #tpu.dot_dimension_numbers<[1], [0], [0], [1], [0, 0, 1, 1], [], []>} : vector<1x84xf32>, vector<84x128xf32>, vector<1x128xf32> -> vector<1x128xf32>
    %c0_106 = arith.constant 0 : index
    %c0_107 = arith.constant 0 : index
    %172 = vector.load %arg11[%c0_106, %c0_107] : memref<1x128xf32, #tpu.memory_space<vmem>>, vector<1x128xf32>
    %173 = arith.addf %171, %172 : vector<1x128xf32>
    %c0_108 = arith.constant 0 : index
    %c0_109 = arith.constant 0 : index
    %c0_110 = arith.constant 0 : index
    %174 = vector.load %arg12[%c0_108, %c0_109, %c0_110] : memref<1x1x128xf32, #tpu.memory_space<vmem>>, vector<1x1x128xf32>
    %175 = vector.shape_cast %174 : vector<1x1x128xf32> to vector<1x128xf32>
    %176 = vector.shape_cast %173 : vector<1x128xf32> to vector<1x1x128xf32>
    tpu.vector_store %arg12[%c0_108, %c0_109, %c0_110], %176 {strides = array<i32>} : memref<1x1x128xf32, #tpu.memory_space<vmem>>, vector<1x1x128xf32>,
    return
  }
  func.func @transform_0(%arg0: i32) -> (i32, i32, i32) {
    %c0_i32 = arith.constant 0 : i32
    %c0_i32_0 = arith.constant 0 : i32
    %c0_i32_1 = arith.constant 0 : i32
    return %arg0, %c0_i32, %c0_i32_0 : i32, i32, i32
  }
  func.func @transform_1(%arg0: i32) -> (i32, i32, i32) {
    %c0_i32 = arith.constant 0 : i32
    %c0_i32_0 = arith.constant 0 : i32
    %c0_i32_1 = arith.constant 0 : i32
    %c0_i32_2 = arith.constant 0 : i32
    return %c0_i32, %c0_i32_0, %c0_i32_1 : i32, i32, i32
  }
  func.func @transform_2(%arg0: i32) -> (i32, i32) {
    %c0_i32 = arith.constant 0 : i32
    %c0_i32_0 = arith.constant 0 : i32
    %c0_i32_1 = arith.constant 0 : i32
    return %c0_i32, %c0_i32_0 : i32, i32
  }
  func.func @transform_3(%arg0: i32) -> (i32, i32, i32) {
    %c0_i32 = arith.constant 0 : i32
    %c0_i32_0 = arith.constant 0 : i32
    %c0_i32_1 = arith.constant 0 : i32
    %c0_i32_2 = arith.constant 0 : i32
    return %c0_i32, %c0_i32_0, %c0_i32_1 : i32, i32, i32
  }
  func.func @transform_4(%arg0: i32) -> (i32, i32) {
    %c0_i32 = arith.constant 0 : i32
    %c0_i32_0 = arith.constant 0 : i32
    %c0_i32_1 = arith.constant 0 : i32
    return %c0_i32, %c0_i32_0 : i32, i32
  }
  func.func @transform_5(%arg0: i32) -> (i32, i32, i32) {
    %c0_i32 = arith.constant 0 : i32
    %c0_i32_0 = arith.constant 0 : i32
    %c0_i32_1 = arith.constant 0 : i32
    %c0_i32_2 = arith.constant 0 : i32
    return %c0_i32, %c0_i32_0, %c0_i32_1 : i32, i32, i32
  }
  func.func @transform_6(%arg0: i32) -> (i32, i32) {
    %c0_i32 = arith.constant 0 : i32
    %c0_i32_0 = arith.constant 0 : i32
    %c0_i32_1 = arith.constant 0 : i32
    return %c0_i32, %c0_i32_0 : i32, i32
  }
  func.func @transform_7(%arg0: i32) -> (i32, i32) {
    %c0_i32 = arith.constant 0 : i32
    %c0_i32_0 = arith.constant 0 : i32
    %c0_i32_1 = arith.constant 0 : i32
    return %c0_i32, %c0_i32_0 : i32, i32
  }
  func.func @transform_8(%arg0: i32) -> (i32, i32) {
    %c0_i32 = arith.constant 0 : i32
    %c0_i32_0 = arith.constant 0 : i32
    %c0_i32_1 = arith.constant 0 : i32
    return %c0_i32, %c0_i32_0 : i32, i32
  }
  func.func @transform_9(%arg0: i32) -> (i32, i32) {
    %c0_i32 = arith.constant 0 : i32
    %c0_i32_0 = arith.constant 0 : i32
    %c0_i32_1 = arith.constant 0 : i32
    return %c0_i32, %c0_i32_0 : i32, i32
  }
  func.func @transform_10(%arg0: i32) -> (i32, i32) {
    %c0_i32 = arith.constant 0 : i32
    %c0_i32_0 = arith.constant 0 : i32
    %c0_i32_1 = arith.constant 0 : i32
    return %c0_i32, %c0_i32_0 : i32, i32
  }
  func.func @transform_11(%arg0: i32) -> (i32, i32, i32) {
    %c0_i32 = arith.constant 0 : i32
    %c0_i32_0 = arith.constant 0 : i32
    %c0_i32_1 = arith.constant 0 : i32
    return %arg0, %c0_i32, %c0_i32_0 : i32, i32, i32
  }
}

</mosaic_0001>

<bundles_post_ra>
// kernel: forward.1
= control target key start
LH: loop header
LB: loop body
LE: loop exit
PB: predicated region body
PF: predicated region fallthrough
CT: control target
= control target key end

     0   :  { %16 = vsyncpa [#allocation4], 0  ;;  %s5428_s0 = inlined_call_operand.vmem [shape: f32[2,32,96], index: 0, kind: input, shape index: {}]   ;;  %s5429_s1 = inlined_call_operand.vmem [shape: f32[5,96,168], index: 1, kind: input, shape index: {}]   ;;  %s5430_s2 = inlined_call_operand.vmem [shape: f32[1,168], index: 2, kind: input, shape index: {}]   ;;  %s5431_s3 = inlined_call_operand.vmem [shape: f32[5,162,160], index: 3, kind: input, shape index: {}]   ;;  %s5432_s4 = inlined_call_operand.vmem [shape: f32[1,160], index: 4, kind: input, shape index: {}]   ;;  %s5433_s5 = inlined_call_operand.vmem [shape: f32[5,144,120], index: 5, kind: input, shape index: {}]   ;;  %s5434_s6 = inlined_call_operand.vmem [shape: f32[1,120], index: 6, kind: input, shape index: {}]   ;;  %s5435_s7 = inlined_call_operand.vmem [shape: f32[120,84], index: 7, kind: input, shape index: {}]   ;;  %s5436_s8 = inlined_call_operand.vmem [shape: f32[1,84], index: 8, kind: input, shape index: {}]   ;;  %s5437_s9 = inlined_call_operand.vmem [shape: f32[84,128], index: 9, kind: input, shape index: {}]   ;;  %s5438_s10 = inlined_call_operand.vmem [shape: f32[1,128], index: 10, kind: input, shape index: {}]   ;;  %s5439_s11 = inlined_call_operand.hbm [shape: f32[2,1,128], index: 11, kind: output, shape index: {}]  }
   0x1   :  { %18 = vsyncpa [#allocation4 + $0x1], 0  ;;  %s3509_s17 = smov 0   ;;  %s3511_s18 = smov 0  }
   0x2   :  { %s3513_s19 = smov 0   ;;  %s3515_s20 = smov 0  }
   0x3 LB: > { %5441 = sst [smem:[#allocation6_spill]] %s3437_s19  ;;  %s3530_s21 = sadd.s32 4294967295, %s3441_s20   ;;  %s3441_s20 = sphi %s3515_s20, %s5451_s20   ;;  %s3437_s19 = sphi %s3513_s19, %s5448_s19   ;;  %s3433_s18 = sphi %s3511_s18, %s5450_s18   ;;  %s3429_s17 = sphi %s3509_s17, %s5449_s17  }
   0x4   : > { %s2857_s22 = sadd.s32 4294967294, %s3441_s20   ;;  %s3534_s23 = sadd.s32 1, %s3441_s20  }
   0x5   : > { %s267_s24 = sadd.s32 1, %s3437_s19  ;;  %s264_s25 = ssub.s32 %s3441_s20, %s3534_s23 }
   0x6   : > { %p277_p0 = scmp.ne.s32.totalorder %s3437_s19, %s3433_s18  ;;  %p265_p1 = scmp.eq.s32.totalorder %s264_s25, 0 }
   0x7   : > { %p278_p2 = scmp.eq.s32.totalorder %s3530_s21, 1  ;;  %p283_p3 = scmp.ne.s32.totalorder %s3433_s18, %s3429_s17 }
   0x8   : > { %p284_p4 = scmp.eq.s32.totalorder %s2857_s22, 1  ;;  %p2860_p7 = scmp.ge.s32.totalorder %s3441_s20, 1 }
   0x9   : > { %s3545_s26 = scalar_select %p265_p1, %s3437_s19, %s267_s24  }
   0xa   : > { %p3547_p5 = por %p278_p2, %p277_p0  ;;  %p3551_p6 = por %p284_p4, %p283_p3 }
   0xb   : > { %5442 = sst [smem:[#allocation7_spill]] %s3545_s26  ;;  %p340_p8 = scmp.lt.s32.totalorder %s3441_s20, 3 }
   0xd   : > { %p341_p9 = pnand %p2860_p7, %p340_p8 }
   0xe   : > { %p379_p10 = scmp.lt.s32.totalorder (!%p341_p9), %s3530_s21, 1  ;;  %s3444_s29 = smov (!%p341_p9), 122  }
   0xf   : > { %344 = sbr.rel (%p341_p9) target bundleno = 1542 (0x606), region = 64  ;;  %s377_s15 = sand.u32 (!%p341_p9), 1, %s3433_s18  }
  0x10   : > { %s378_s24 = scalar_lea.vmem (!%p341_p9), [#allocation3], %s377_s15  ;;  %s3448_s26 = smov (!%p341_p9), [#allocation3]  }
  0x11   : > { %s2802_s25 = sshll.u32 (!%p341_p9), %s378_s24, 4  ;;  %s2803_s25 = int_to_ptr.vmem [resolvable:$true] %s2802_s25 }
  0x12   : > { %s3381_s14 = scalar_lea.vmem (!%p341_p9), %s2803_s25, 16 }
  0x13   : > { %p3382_p11 = scmp.ne.s32.totalorder (!%p341_p9), %s2803_s25, %s3381_s14 }
  0x14   : > { %v2886_v0 = vld [vmem:[%s5429_s1 + $0x178] sm:$0xff]  ;;  %v2885_v2 = vld [vmem:[%s5429_s1 + $0x170] sm:$0xff]  ;;  %v2884_v4 = vld [vmem:[%s5429_s1 + $0x168] sm:$0xff]  ;;  %s3615_s16 = scalar_select %p379_p10, %s3530_s21, 1  ;;  %vm441_vm0 = vcmask 1046528   ;;  %vm449_vm1 = vcmask 785408  }
  0x15   : > { %v411_v1 = vld [vmem:[%s5429_s1 + $0xb8] sm:$0xff]  ;;  %466 = vmatprep.subr.mxu0 %v2886_v0  ;;  %v410_v3 = vld [vmem:[%s5429_s1 + $0xb0] sm:$0xff]  ;;  %v409_v5 = vld [vmem:[%s5429_s1 + $0xa8] sm:$0xff]  ;;  %v3443_v53 = vmov 0.0   ;;  %vm669_vm2 = vcmask 1045504   ;;  %vm807_vm3 = vcmask 1044480   ;;  %p3383_p12 = pnand %p3382_p11, %p3547_p5 }
  0x16   : > { %563 = vmatprep.subr.mxu1 %v411_v1  ;;  %467 = vmatpush1.msra.mxu0 %v2885_v2  ;;  %v2883_v6 = vld [vmem:[%s5429_s1 + $0x160] sm:$0xff]  ;;  %v2882_v8 = vld [vmem:[%s5429_s1 + $0x158] sm:$0xff]  ;;  %v2881_v10 = vld [vmem:[%s5429_s1 + $0x150] sm:$0xff]  ;;  %s3250_s13 = sshll.u32 %s3615_s16, 5  ;;  %vm945_vm4 = vcmask 1043456   ;;  %vm1452_vm5 = vcmask 1041408  }
  0x17   : > { %564 = vmatpush1.msra.mxu1 %v410_v3  ;;  %v408_v7 = vld [vmem:[%s5429_s1 + $0xa0] sm:$0xff]  ;;  %468 = vmatprep.subr.mxu0 %v2884_v4  ;;  %v407_v9 = vld [vmem:[%s5429_s1 + $0x98] sm:$0xff]  ;;  %v406_v11 = vld [vmem:[%s5429_s1 + $0x90] sm:$0xff]  ;;  %s3663_s19 = scalar_lea.vmem %s5428_s0, %s3250_s13  ;;  %vm1110_vm6 = vcmask 998400   ;;  %vm1447_vm8 = vcmask 277504   ;;  %vm2107_vm9 = vcmask 916480   ;;  %p3384_p13 = pneg %p3383_p12 }
  0x18   : > { %565 = vmatprep.subr.mxu1 %v409_v5  ;;  %469 = vmatpush1.msra.mxu0 %v2883_v6  ;;  %v2880_v12 = vld [vmem:[%s5429_s1 + $0x148] sm:$0xff]  ;;  %v2879_v14 = vld [vmem:[%s5429_s1 + $0x140] sm:$0xff]  ;;  %v2878_v16 = vld [vmem:[%s5429_s1 + $0x138] sm:$0xff]  ;;  %vm2153_vm10 = vcmask 130048   ;;  %vm3447_vm11 = vmmov 0   ;;  %vm2624_vm12 = vcmask 982016  }
  0x19   : > { %566 = vmatpush1.msra.mxu1 %v408_v7  ;;  %v405_v13 = vld [vmem:[%s5429_s1 + $0x88] sm:$0xff]  ;;  %470 = vmatprep.subr.mxu0 %v2882_v8  ;;  %v404_v15 = vld [vmem:[%s5429_s1 + $0x80] sm:$0xff]  ;;  %v403_v17 = vld [vmem:[%s5429_s1 + $0x78] sm:$0xff]  ;;  %vm2711_vm13 = vcmask 687104   ;;  %s2790_s13 = scalar_lea.sflag [#allocation4], %s377_s15 }
  0x1a   : > { %567 = vmatprep.subr.mxu1 %v407_v9  ;;  %471 = vmatpush1.msra.mxu0 %v2881_v10  ;;  %v2877_v18 = vld [vmem:[%s5429_s1 + $0x130] sm:$0xff]  ;;  %v2876_v20 = vld [vmem:[%s5429_s1 + $0x128] sm:$0xff]  ;;  %v2875_v22 = vld [vmem:[%s5429_s1 + $0x120] sm:$0xff] }
  0x1b   : > { %568 = vmatpush1.msra.mxu1 %v406_v11  ;;  %472 = vmatprep.subr.mxu0 %v2880_v12  ;;  %v402_v19 = vld [vmem:[%s5429_s1 + $0x70] sm:$0xff]  ;;  %v401_v21 = vld [vmem:[%s5429_s1 + $0x68] sm:$0xff]  ;;  %v400_v23 = vld [vmem:[%s5429_s1 + $0x60] sm:$0xff] }
  0x1c   : > { %569 = vmatprep.subr.mxu1 %v405_v13  ;;  %473 = vmatpush1.msra.mxu0 %v2879_v14  ;;  %v2874_v24 = vld [vmem:[%s5429_s1 + $0x118] sm:$0xff]  ;;  %v2873_v26 = vld [vmem:[%s5429_s1 + $0x110] sm:$0xff]  ;;  %v2872_v28 = vld [vmem:[%s5429_s1 + $0x108] sm:$0xff] }
  0x1d   : > { %570 = vmatpush1.msra.mxu1 %v404_v15  ;;  %474 = vmatprep.subr.mxu0 %v2878_v16  ;;  %v399_v25 = vld [vmem:[%s5429_s1 + $0x58] sm:$0xff]  ;;  %v398_v27 = vld [vmem:[%s5429_s1 + $0x50] sm:$0xff]  ;;  %v397_v29 = vld [vmem:[%s5429_s1 + $0x48] sm:$0xff] }
  0x1e   : > { %571 = vmatprep.subr.mxu1 %v403_v17  ;;  %475 = vmatpush1.msra.mxu0 %v2877_v18  ;;  %v2871_v30 = vld [vmem:[%s5429_s1 + $0x100] sm:$0xff]  ;;  %v2870_v32 = vld [vmem:[%s5429_s1 + $0xf8] sm:$0xff]  ;;  %v2869_v34 = vld [vmem:[%s5429_s1 + $0xf0] sm:$0xff] }
  0x1f   : > { %572 = vmatpush1.msra.mxu1 %v402_v19  ;;  %476 = vmatprep.subr.mxu0 %v2876_v20  ;;  %v396_v31 = vld [vmem:[%s5429_s1 + $0x40] sm:$0xff]  ;;  %v395_v33 = vld [vmem:[%s5429_s1 + $0x38] sm:$0xff]  ;;  %v394_v35 = vld [vmem:[%s5429_s1 + $0x30] sm:$0xff] }
  0x20   : > { %573 = vmatprep.subr.mxu1 %v401_v21  ;;  %477 = vmatpush1.msra.mxu0 %v2875_v22  ;;  %v2868_v36 = vld [vmem:[%s5429_s1 + $0xe8] sm:$0xff]  ;;  %v3684_v38 = vld [vmem:[%s3663_s19] sm:$0xff]  ;;  %v2866_v42 = vld [vmem:[%s5429_s1 + $0xd8] sm:$0xff] }
  0x21   : > { %574 = vmatpush1.msra.mxu1 %v400_v23  ;;  %478 = vmatprep.subr.mxu0 %v2874_v24  ;;  %v393_v37 = vld [vmem:[%s5429_s1 + $0x28] sm:$0xff]  ;;  %v2867_v40 = vld [vmem:[%s5429_s1 + $0xe0] sm:$0xff]  ;;  %v391_v43 = vld [vmem:[%s5429_s1 + $0x18] sm:$0xff]  ;;  %v442_v46 = vrot.slane %v3684_v38, 1 }
  0x22   : > { %575 = vmatprep.subr.mxu1 %v399_v25  ;;  %479 = vmatpush1.msra.mxu0 %v2873_v26  ;;  %v3687_v39 = vld [vmem:[%s3663_s19 + $0x8] sm:$0xff]  ;;  %v392_v41 = vld [vmem:[%s5429_s1 + $0x20] sm:$0xff]  ;;  %v2865_v44 = vld [vmem:[%s5429_s1 + $0xd0] sm:$0xff] }
  0x23   : > { %576 = vmatpush1.msra.mxu1 %v398_v27  ;;  %480 = vmatprep.subr.mxu0 %v2872_v28  ;;  %v390_v45 = vld [vmem:[%s5429_s1 + $0x10] sm:$0xff]  ;;  %v443_v47 = vrot.slane %v3687_v39, 1  ;;  %v2864_v48 = vld [vmem:[%s5429_s1 + $0xc8] sm:$0xff]  ;;  %v2863_v50 = vld [vmem:[%s5429_s1 + $0xc0] sm:$0xff] }
  0x24   : > { %577 = vmatprep.subr.mxu1 %v397_v29  ;;  %481 = vmatpush1.msra.mxu0 %v2871_v30  ;;  %v389_v49 = vld [vmem:[%s5429_s1 + $0x8] sm:$0xff]  ;;  %v388_v51 = vld [vmem:[%s5429_s1] sm:$0xff]  ;;  %v2918_v54 = vld [vmem:[%s5429_s1 + $0x238] sm:$0xff] }
  0x25   : > { %578 = vmatpush1.msra.mxu1 %v396_v31  ;;  %482 = vmatprep.subr.mxu0 %v2870_v32  ;;  %v444_v52 = vsel %vm441_vm0, %v442_v46, %v443_v47  ;;  %v2946_v55 = vld [vmem:[%s5429_s1 + $0x2f8] sm:$0xff]  ;;  %v2917_v56 = vld [vmem:[%s5429_s1 + $0x230] sm:$0xff]  ;;  %v2916_v58 = vld [vmem:[%s5429_s1 + $0x228] sm:$0xff]  ;;  %v809_v46 = vrot.slane %v3687_v39, 3 }
  0x26   : > { %579 = vmatprep.subr.mxu1 %v395_v33  ;;  %483 = vmatpush1.msra.mxu0 %v2869_v34  ;;  %v2945_v57 = vld [vmem:[%s5429_s1 + $0x2f0] sm:$0xff]  ;;  %v2944_v59 = vld [vmem:[%s5429_s1 + $0x2e8] sm:$0xff]  ;;  %v2915_v60 = vld [vmem:[%s5429_s1 + $0x220] sm:$0xff] }
  0x27   : > { %580 = vmatpush1.msra.mxu1 %v394_v35  ;;  %484 = vmatprep.subr.mxu0 %v2868_v36  ;;  %v2943_v61 = vld [vmem:[%s5429_s1 + $0x2e0] sm:$0xff]  ;;  %v2914_v62 = vld [vmem:[%s5429_s1 + $0x218] sm:$0xff]  ;;  %v3760_v0 = vld [vmem:[%s3663_s19 + $0x10] sm:$0xff]  ;;  %v670_v36 = vrot.slane %v3684_v38, 2 }
  0x28   : > { %581 = vmatprep.subr.mxu1 %v393_v37  ;;  %485 = vmatpush1.msra.mxu0 %v2867_v40  ;;  %v2942_v63 = vld [vmem:[%s5429_s1 + $0x2d8] sm:$0xff]  ;;  %v2913_v1 = vld [vmem:[%s5429_s1 + $0x210] sm:$0xff]  ;;  %v2912_v3 = vld [vmem:[%s5429_s1 + $0x208] sm:$0xff]  ;;  %v445_v7 = vrot.slane %v3760_v0, 1  ;;  %v671_v37 = vrot.slane %v3687_v39, 2 }
  0x29   : > { %582 = vmatpush1.msra.mxu1 %v392_v41  ;;  %486 = vmatprep.subr.mxu0 %v2866_v42  ;;  %v2941_v2 = vld [vmem:[%s5429_s1 + $0x2d0] sm:$0xff]  ;;  %v2940_v4 = vld [vmem:[%s5429_s1 + $0x2c8] sm:$0xff]  ;;  %v2911_v5 = vld [vmem:[%s5429_s1 + $0x200] sm:$0xff] }
  0x2a   : > { %583 = vmatprep.subr.mxu1 %v391_v43  ;;  %487 = vmatpush1.msra.mxu0 %v2865_v44  ;;  %v2939_v6 = vld [vmem:[%s5429_s1 + $0x2c0] sm:$0xff]  ;;  %v2910_v8 = vld [vmem:[%s5429_s1 + $0x1f8] sm:$0xff]  ;;  %v2909_v9 = vld [vmem:[%s5429_s1 + $0x1f0] sm:$0xff]  ;;  %v446_v13 = vsel %vm441_vm0, %v443_v47, %v445_v7 }
  0x2b   : > { %584 = vmatpush1.msra.mxu1 %v390_v45  ;;  %488 = vmatprep.subr.mxu0 %v2864_v48  ;;  %v2908_v10 = vld [vmem:[%s5429_s1 + $0x1e8] sm:$0xff]  ;;  %v2938_v11 = vld [vmem:[%s5429_s1 + $0x2b8] sm:$0xff]  ;;  %v2907_v14 = vld [vmem:[%s5429_s1 + $0x1e0] sm:$0xff]  ;;  %v808_v45 = vrot.slane %v3684_v38, 3  ;;  %v672_v48 = vsel %vm669_vm2, %v670_v36, %v671_v37 }
  0x2c   : > { %585 = vmatprep.subr.mxu1 %v389_v49  ;;  %489 = vmatpush1.msra.mxu0 %v2863_v50  ;;  %v3794_v12 = vld [vmem:[%s3663_s19 + $0x18] sm:$0xff]  ;;  %v2937_v15 = vld [vmem:[%s5429_s1 + $0x2b0] sm:$0xff]  ;;  %v2936_v17 = vld [vmem:[%s5429_s1 + $0x2a8] sm:$0xff] }
  0x2d   : > { %522 = vmatprep.mubr.f32.mxu0 %v3443_v53  ;;  %586 = vmatpush1.msra.mxu1 %v388_v51  ;;  %v2906_v16 = vld [vmem:[%s5429_s1 + $0x1d8] sm:$0xff]  ;;  %v447_v18 = vrot.slane %v3794_v12, 1  ;;  %v2905_v19 = vld [vmem:[%s5429_s1 + $0x1d0] sm:$0xff]  ;;  %v2935_v20 = vld [vmem:[%s5429_s1 + $0x2a0] sm:$0xff] }
  0x2e   : > { %619 = vmatprep.mubr.f32.mxu1 %v3443_v53  ;;  %2887 = vmatmul.mubr.msk.f32.vlgmr.msra.gmra.mxu0 %vm449_vm1, %v444_v52  ;;  %v2904_v21 = vld [vmem:[%s5429_s1 + $0x1c8] sm:$0xff]  ;;  %v2934_v22 = vld [vmem:[%s5429_s1 + $0x298] sm:$0xff]  ;;  %v2903_v24 = vld [vmem:[%s5429_s1 + $0x1c0] sm:$0xff]  ;;  %v673_v52 = vrot.slane %v3760_v0, 2 }
  0x2f   : > { %2891 = vmatmul.mubr.msk.f32.vlgmr.msra.gmra.mxu1 %vm449_vm1, %v3684_v38  ;;  %693 = vmatprep.subr.mxu0 %v2918_v54  ;;  %v448_v23 = vsel %vm441_vm0, %v445_v7, %v447_v18  ;;  %v2933_v25 = vld [vmem:[%s5429_s1 + $0x290] sm:$0xff]  ;;  %v2902_v26 = vld [vmem:[%s5429_s1 + $0x1b8] sm:$0xff]  ;;  %v2932_v27 = vld [vmem:[%s5429_s1 + $0x288] sm:$0xff] }
  0x30   : > { %831 = vmatprep.subr.mxu1 %v2946_v55  ;;  %694 = vmatpush1.msra.mxu0 %v2917_v56  ;;  %v2901_v28 = vld [vmem:[%s5429_s1 + $0x1b0] sm:$0xff]  ;;  %v2931_v29 = vld [vmem:[%s5429_s1 + $0x280] sm:$0xff]  ;;  %v2900_v30 = vld [vmem:[%s5429_s1 + $0x1a8] sm:$0xff]  ;;  %v810_v55 = vsel %vm807_vm3, %v808_v45, %v809_v46  ;;  %v811_v56 = vrot.slane %v3760_v0, 3 }
  0x31   : > { %832 = vmatpush1.msra.mxu1 %v2945_v57  ;;  %695 = vmatprep.subr.mxu0 %v2916_v58  ;;  %v2930_v31 = vld [vmem:[%s5429_s1 + $0x278] sm:$0xff]  ;;  %v2899_v32 = vld [vmem:[%s5429_s1 + $0x1a0] sm:$0xff]  ;;  %v2929_v33 = vld [vmem:[%s5429_s1 + $0x270] sm:$0xff] }
  0x32   : > { %833 = vmatprep.subr.mxu1 %v2944_v59  ;;  %696 = vmatpush1.msra.mxu0 %v2915_v60  ;;  %v2898_v34 = vld [vmem:[%s5429_s1 + $0x198] sm:$0xff]  ;;  %v2928_v35 = vld [vmem:[%s5429_s1 + $0x268] sm:$0xff]  ;;  %v2897_v40 = vld [vmem:[%s5429_s1 + $0x190] sm:$0xff]  ;;  %v674_v59 = vsel %vm669_vm2, %v671_v37, %v673_v52 }
  0x33   : > { %834 = vmatpush1.msra.mxu1 %v2943_v61  ;;  %697 = vmatprep.subr.mxu0 %v2914_v62  ;;  %v2927_v41 = vld [vmem:[%s5429_s1 + $0x260] sm:$0xff]  ;;  %v2896_v42 = vld [vmem:[%s5429_s1 + $0x188] sm:$0xff]  ;;  %v2926_v43 = vld [vmem:[%s5429_s1 + $0x258] sm:$0xff]  ;;  %v675_v61 = vrot.slane %v3794_v12, 2 }
  0x34   : > { %835 = vmatprep.subr.mxu1 %v2942_v63  ;;  %698 = vmatpush1.msra.mxu0 %v2913_v1  ;;  %v2895_v44 = vld [vmem:[%s5429_s1 + $0x180] sm:$0xff]  ;;  %v2925_v47 = vld [vmem:[%s5429_s1 + $0x250] sm:$0xff]  ;;  %v2924_v49 = vld [vmem:[%s5429_s1 + $0x248] sm:$0xff]  ;;  %v812_v63 = vsel %vm807_vm3, %v809_v46, %v811_v56  ;;  %v813_v1 = vrot.slane %v3794_v12, 3 }
  0x35   : > { %836 = vmatpush1.msra.mxu1 %v2941_v2  ;;  %699 = vmatprep.subr.mxu0 %v2912_v3  ;;  %v2974_v50 = vld [vmem:[%s5429_s1 + $0x3b8] sm:$0xff]  ;;  %v2923_v51 = vld [vmem:[%s5429_s1 + $0x240] sm:$0xff]  ;;  %v2973_v54 = vld [vmem:[%s5429_s1 + $0x3b0] sm:$0xff] }
  0x36   : > { %837 = vmatprep.subr.mxu1 %v2940_v4  ;;  %700 = vmatpush1.msra.mxu0 %v2911_v5  ;;  %v2972_v57 = vld [vmem:[%s5429_s1 + $0x3a8] sm:$0xff]  ;;  %v2971_v58 = vld [vmem:[%s5429_s1 + $0x3a0] sm:$0xff]  ;;  %v2970_v60 = vld [vmem:[%s5429_s1 + $0x398] sm:$0xff]  ;;  %v676_v4 = vsel %vm669_vm2, %v673_v52, %v675_v61  ;;  %v814_v7 = vsel %vm807_vm3, %v811_v56, %v813_v1 }
  0x37   : > { %838 = vmatpush1.msra.mxu1 %v2939_v6  ;;  %701 = vmatprep.subr.mxu0 %v2910_v8  ;;  %v2969_v62 = vld [vmem:[%s5429_s1 + $0x390] sm:$0xff]  ;;  %v2968_v2 = vld [vmem:[%s5429_s1 + $0x388] sm:$0xff]  ;;  %v2967_v3 = vld [vmem:[%s5429_s1 + $0x380] sm:$0xff] }
  0x38   : > { %528 = vmatprep.mubr.f32.mxu0 %v3443_v53  ;;  %702 = vmatpush1.msra.mxu0 %v2909_v9  ;;  %v2966_v5 = vld [vmem:[%s5429_s1 + $0x378] sm:$0xff]  ;;  %v2965_v6 = vld [vmem:[%s5429_s1 + $0x370] sm:$0xff]  ;;  %v2964_v8 = vld [vmem:[%s5429_s1 + $0x368] sm:$0xff] }
  0x39   : > { %625 = vmatprep.mubr.f32.mxu1 %v3443_v53  ;;  %703 = vmatprep.subr.mxu0 %v2908_v10  ;;  %v2963_v9 = vld [vmem:[%s5429_s1 + $0x360] sm:$0xff]  ;;  %v2962_v10 = vld [vmem:[%s5429_s1 + $0x358] sm:$0xff]  ;;  %v3007_v36 = vld [vmem:[%s5431_s3 + $0x230] sm:$0xff] }
  0x3a   : > { %839 = vmatprep.subr.mxu1 %v2938_v11  ;;  %2888 = vmatmul.mubr.msk.f32.gmra.mxu0 %vm449_vm1, %v446_v13  ;;  %v2961_v11 = vld [vmem:[%s5429_s1 + $0x350] sm:$0xff]  ;;  %v2960_v13 = vld [vmem:[%s5429_s1 + $0x348] sm:$0xff]  ;;  %v1370_v37 = vld [vmem:[%s5431_s3 + $0xc0] sm:$0xff] }
  0x3b   : > { %2892 = vmatmul.mubr.msk.f32.gmra.mxu1 %vm449_vm1, %v3687_v39  ;;  %704 = vmatpush1.msra.mxu0 %v2907_v14  ;;  %v2959_v14 = vld [vmem:[%s5429_s1 + $0x340] sm:$0xff] }
  0x3c   : > { %840 = vmatpush1.msra.mxu1 %v2937_v15  ;;  %705 = vmatprep.subr.mxu0 %v2906_v16  ;;  %v2958_v15 = vld [vmem:[%s5429_s1 + $0x338] sm:$0xff]  ;;  %v2957_v16 = vld [vmem:[%s5429_s1 + $0x330] sm:$0xff] }
  0x3d   : > { %841 = vmatprep.subr.mxu1 %v2936_v17  ;;  %706 = vmatpush1.msra.mxu0 %v2905_v19  ;;  %v2956_v17 = vld [vmem:[%s5429_s1 + $0x328] sm:$0xff]  ;;  %v2954_v19 = vld [vmem:[%s5429_s1 + $0x318] sm:$0xff] }
  0x3e   : > { %842 = vmatpush1.msra.mxu1 %v2935_v20  ;;  %534 = vmatprep.mubr.f32.mxu0 %v3443_v53  ;;  %v946_v20 = vrot.slane %v3684_v38, 4 }
  0x3f   : > { %631 = vmatprep.mubr.f32.mxu1 %v3443_v53  ;;  %707 = vmatprep.subr.mxu0 %v2904_v21  ;;  %v947_v21 = vrot.slane %v3687_v39, 4  ;;  %v949_v39 = vrot.slane %v3760_v0, 4 }
  0x40   : > { %843 = vmatprep.subr.mxu1 %v2934_v22  ;;  %2889 = vmatmul.mubr.msk.f32.gmra.mxu0 %vm449_vm1, %v448_v23  ;;  %v2953_v22 = vld [vmem:[%s5429_s1 + $0x310] sm:$0xff]  ;;  %v2952_v23 = vld [vmem:[%s5429_s1 + $0x308] sm:$0xff] }
  0x41   : > { %2893 = vmatmul.mubr.msk.f32.gmra.mxu1 %vm449_vm1, %v3760_v0  ;;  %708 = vmatpush1.msra.mxu0 %v2903_v24  ;;  %v2951_v24 = vld [vmem:[%s5429_s1 + $0x300] sm:$0xff]  ;;  %v948_v38 = vsel %vm945_vm4, %v946_v20, %v947_v21  ;;  %v1377_v0 = vld [vmem:[%s5431_s3 + $0xf8] sm:$0xff] }
  0x42   : > { %844 = vmatpush1.msra.mxu1 %v2933_v25  ;;  %709 = vmatprep.subr.mxu0 %v2902_v26  ;;  %v950_v25 = vsel %vm945_vm4, %v947_v21, %v949_v39  ;;  %v951_v26 = vrot.slane %v3794_v12, 4  ;;  %v1058_v21 = vld [vmem:[%s5430_s2] sm:$0x3] }
  0x43   : > { %845 = vmatprep.subr.mxu1 %v2932_v27  ;;  %710 = vmatpush1.msra.mxu0 %v2901_v28  ;;  %v1375_v28 = vld [vmem:[%s5431_s3 + $0xe8] sm:$0xff] }
  0x44   : > { %846 = vmatpush1.msra.mxu1 %v2931_v29  ;;  %540 = vmatprep.mubr.f32.mxu0 %v3443_v53  ;;  %v952_v27 = vsel %vm945_vm4, %v949_v39, %v951_v26  ;;  %v1374_v29 = vld [vmem:[%s5431_s3 + $0xe0] sm:$0xff] }
  0x45   : > { %637 = vmatprep.mubr.f32.mxu1 %v3443_v53  ;;  %711 = vmatprep.subr.mxu0 %v2900_v30  ;;  %v1373_v30 = vld [vmem:[%s5431_s3 + $0xd8] sm:$0xff] }
  0x46   : > { %847 = vmatprep.subr.mxu1 %v2930_v31  ;;  %2890 = vmatmul.mubr.msk.f32.gmra.mxu0 %vm449_vm1, %v447_v18  ;;  %v2955_v18 = vld [vmem:[%s5429_s1 + $0x320] sm:$0xff]  ;;  %v3010_v31 = vld [vmem:[%s5431_s3 + $0x248] sm:$0xff] }
  0x47   : > { %2894 = vmatmul.mubr.msk.f32.gmra.mxu1 %vm449_vm1, %v3794_v12  ;;  %712 = vmatpush1.msra.mxu0 %v2899_v32  ;;  %v1376_v12 = vld [vmem:[%s5431_s3 + $0xf0] sm:$0xff] }
  0x48   : > { %848 = vmatpush1.msra.mxu1 %v2929_v33  ;;  %713 = vmatprep.subr.mxu0 %v2898_v34  ;;  %v1372_v32 = vld [vmem:[%s5431_s3 + $0xd0] sm:$0xff]  ;;  %v3009_v33 = vld [vmem:[%s5431_s3 + $0x240] sm:$0xff]  ;;  %v3008_v34 = vld [vmem:[%s5431_s3 + $0x238] sm:$0xff] }
  0x49   : > { %849 = vmatprep.subr.mxu1 %v2928_v35  ;;  %714 = vmatpush1.msra.mxu0 %v2897_v40  ;;  %v1371_v35 = vld [vmem:[%s5431_s3 + $0xc8] sm:$0xff]  ;;  %v1369_v40 = vld [vmem:[%s5431_s3 + $0xb8] sm:$0xff] }
  0x4a   : > { %850 = vmatpush1.msra.mxu1 %v2927_v41  ;;  %715 = vmatprep.subr.mxu0 %v2896_v42  ;;  %v1368_v41 = vld [vmem:[%s5431_s3 + $0xb0] sm:$0xff]  ;;  %v1367_v42 = vld [vmem:[%s5431_s3 + $0xa8] sm:$0xff] }
  0x4b   : > { %851 = vmatprep.subr.mxu1 %v2926_v43  ;;  %716 = vmatpush1.msra.mxu0 %v2895_v44 }
  0x4c   : > { %749 = vmatprep.mubr.f32.mxu0 %v3443_v53  ;;  %852 = vmatpush1.msra.mxu1 %v2925_v47 }
  0x4d   : > { %2919 = vmatmul.mubr.msk.f32.vlgmr.msra.gmra.mxu0 %vm449_vm1, %v672_v48  ;;  %853 = vmatprep.subr.mxu1 %v2924_v49 }
  0x4e   : > { %969 = vmatprep.subr.mxu0 %v2974_v50  ;;  %854 = vmatpush1.msra.mxu1 %v2923_v51 }
  0x4f   : > { %887 = vmatprep.mubr.f32.mxu1 %v3443_v53  ;;  %970 = vmatpush1.msra.mxu0 %v2973_v54 }
  0x50   : > { %2947 = vmatmul.mubr.msk.f32.vlgmr.msra.gmra.mxu1 %vm449_vm1, %v810_v55  ;;  %971 = vmatprep.subr.mxu0 %v2972_v57 }
  0x51   : > { %755 = vmatprep.mubr.f32.mxu0 %v3443_v53  ;;  %972 = vmatpush1.msra.mxu0 %v2971_v58 }
  0x52   : > { %893 = vmatprep.mubr.f32.mxu1 %v3443_v53  ;;  %2920 = vmatmul.mubr.msk.f32.gmra.mxu0 %vm449_vm1, %v674_v59 }
  0x53   : > { %973 = vmatprep.subr.mxu0 %v2970_v60  ;;  %761 = vmatprep.mubr.f32.mxu0 %v3443_v53 }
  0x54   : > { %974 = vmatpush1.msra.mxu0 %v2969_v62  ;;  %2948 = vmatmul.mubr.msk.f32.gmra.mxu1 %vm449_vm1, %v812_v63 }
  0x55   : > { %975 = vmatprep.subr.mxu0 %v2968_v2  ;;  %899 = vmatprep.mubr.f32.mxu1 %v3443_v53 }
  0x56   : > { %976 = vmatpush1.msra.mxu0 %v2967_v3  ;;  %1459 = vmatprep.subr.mxu1 %v3010_v31 }
  0x57   : > { %2921 = vmatmul.mubr.msk.f32.gmra.mxu0 %vm449_vm1, %v676_v4  ;;  %977 = vmatprep.subr.mxu0 %v2966_v5  ;;  %v1060_v4 = vlaneseq }
  0x58   : > { %978 = vmatpush1.msra.mxu0 %v2965_v6  ;;  %2949 = vmatmul.mubr.msk.f32.gmra.mxu1 %vm449_vm1, %v814_v7 }
  0x59   : > { %979 = vmatprep.subr.mxu0 %v2964_v8  ;;  %767 = vmatprep.mubr.f32.mxu0 %v3443_v53  ;;  %v4081_v7 = vshrl.u32 %v1060_v4, 7  ;;  %vm4408_vm7 = vcmp.lt.s32.totalorder %v1060_v4, 162 }
  0x5a   : > { %980 = vmatpush1.msra.mxu0 %v2963_v9  ;;  %905 = vmatprep.mubr.f32.mxu1 %v3443_v53 }
  0x5b   : > { %2922 = vmatmul.mubr.msk.f32.gmra.mxu0 %vm449_vm1, %v675_v61  ;;  %981 = vmatprep.subr.mxu0 %v2962_v10  ;;  %v3006_v10 = vld [vmem:[%s5431_s3 + $0x228] sm:$0xff] }
  0x5c   : > { %982 = vmatpush1.msra.mxu0 %v2961_v11  ;;  %2950 = vmatmul.mubr.msk.f32.gmra.mxu1 %vm449_vm1, %v813_v1  ;;  %v1366_v11 = vld [vmem:[%s5431_s3 + $0xa0] sm:$0xff] }
  0x5d   : > { %983 = vmatprep.subr.mxu0 %v2960_v13  ;;  %1025 = vmatprep.mubr.f32.mxu0 %v3443_v53  ;;  %v3005_v13 = vld [vmem:[%s5431_s3 + $0x220] sm:$0xff] }
  0x5e   : > { %984 = vmatpush1.msra.mxu0 %v2959_v14  ;;  %1460 = vmatpush1.msra.mxu1 %v3009_v33  ;;  %v3000_v33 = vld [vmem:[%s5431_s3 + $0x1f8] sm:$0xff] }
  0x5f   : > { %985 = vmatprep.subr.mxu0 %v2958_v15  ;;  %1461 = vmatprep.subr.mxu1 %v3008_v34  ;;  %v1062_v15 = vsub.s32 0, %v4081_v7  ;;  %v1360_v34 = vld [vmem:[%s5431_s3 + $0x70] sm:$0xff] }
  0x60   : > { %986 = vmatpush1.msra.mxu0 %v2957_v16  ;;  %1462 = vmatpush1.msra.mxu1 %v3007_v36  ;;  %v1365_v16 = vld [vmem:[%s5431_s3 + $0x98] sm:$0xff] }
  0x61   : > { %987 = vmatprep.subr.mxu0 %v2956_v17  ;;  %1463 = vmatprep.subr.mxu1 %v3006_v10  ;;  %v3004_v17 = vld [vmem:[%s5431_s3 + $0x218] sm:$0xff] }
  0x62   : > { %988 = vmatpush1.msra.mxu0 %v2955_v18  ;;  %v1364_v18 = vld [vmem:[%s5431_s3 + $0x90] sm:$0xff]  ;;  %1464 = vmatpush1.msra.mxu1 %v3005_v13 }
  0x63   : > { %989 = vmatprep.subr.mxu0 %v2954_v19  ;;  %1465 = vmatprep.subr.mxu1 %v3004_v17  ;;  %v2994_v17 = vld [vmem:[%s5431_s3 + $0x1c8] sm:$0xff] }
  0x64   : > { %990 = vmatpush1.msra.mxu0 %v2953_v22  ;;  %v3003_v22 = vld [vmem:[%s5431_s3 + $0x210] sm:$0xff] }
  0x65   : > { %991 = vmatprep.subr.mxu0 %v2952_v23  ;;  %v1363_v23 = vld [vmem:[%s5431_s3 + $0x88] sm:$0xff]  ;;  %1466 = vmatpush1.msra.mxu1 %v3003_v22 }
  0x66   : > { %992 = vmatpush1.msra.mxu0 %v2951_v24  ;;  %v1066_v24 = vsub.s32 1, %v4081_v7 }
  0x67   : > { %2975 = vmatmul.mubr.msk.f32.vlgmr.msra.gmra.mxu0 %vm449_vm1, %v948_v38  ;;  %1548 = vmatprep.subr.mxu0 %v1377_v0 }
  0x68   : > { %1031 = vmatprep.mubr.f32.mxu0 %v3443_v53  ;;  %1549 = vmatpush1.msra.mxu0 %v1376_v12  ;;  %v4126_v12 = vrot.slane %v1058_v21, %v1062_v15 }
  0x69   : > { %1550 = vmatprep.subr.mxu0 %v1375_v28  ;;  %v3001_v28 = vld [vmem:[%s5431_s3 + $0x200] sm:$0xff] }
  0x6a   : > { %1551 = vmatpush1.msra.mxu0 %v1374_v29  ;;  %v1361_v29 = vld [vmem:[%s5431_s3 + $0x78] sm:$0xff] }
  0x6b   : > { %2976 = vmatmul.mubr.msk.f32.gmra.mxu0 %vm449_vm1, %v950_v25  ;;  %1552 = vmatprep.subr.mxu0 %v1373_v30 }
  0x6c   : > { %1037 = vmatprep.mubr.f32.mxu0 %v3443_v53  ;;  %1553 = vmatpush1.msra.mxu0 %v1372_v32 }
  0x6d   : > { %1554 = vmatprep.subr.mxu0 %v1371_v35 }
  0x6e   : > { %1555 = vmatpush1.msra.mxu0 %v1370_v37  ;;  %v4142_v37 = vrot.slane %v1058_v21, %v1066_v24 }
  0x6f   : > { %2977 = vmatmul.mubr.msk.f32.gmra.mxu0 %vm449_vm1, %v952_v27  ;;  %1556 = vmatprep.subr.mxu0 %v1369_v40  ;;  %v1362_v27 = vld [vmem:[%s5431_s3 + $0x80] sm:$0xff]  ;;  %v2999_v40 = vld [vmem:[%s5431_s3 + $0x1f0] sm:$0xff] }
  0x70   : > { %1043 = vmatprep.mubr.f32.mxu0 %v3443_v53  ;;  %1557 = vmatpush1.msra.mxu0 %v1368_v41  ;;  %v1359_v41 = vld [vmem:[%s5431_s3 + $0x68] sm:$0xff] }
  0x71   : > { %1558 = vmatprep.subr.mxu0 %v1367_v42 }
  0x72   : > { %1559 = vmatpush1.msra.mxu0 %v1366_v11 }
  0x73   : > { %2978 = vmatmul.mubr.msk.f32.gmra.mxu0 %vm449_vm1, %v951_v26  ;;  %1560 = vmatprep.subr.mxu0 %v1365_v16  ;;  %v3002_v26 = vld [vmem:[%s5431_s3 + $0x208] sm:$0xff] }
  0x74   : > { %1561 = vmatpush1.msra.mxu0 %v1364_v18  ;;  %1467 = vmatprep.subr.mxu1 %v3002_v26 }
  0x75   : > { %1562 = vmatprep.subr.mxu0 %v1363_v23  ;;  %1468 = vmatpush1.msra.mxu1 %v3001_v28  ;;  %v2992_v23 = vld [vmem:[%s5431_s3 + $0x1b8] sm:$0xff]  ;;  %v2991_v28 = vld [vmem:[%s5431_s3 + $0x1b0] sm:$0xff] }
  0x76   : > { %1563 = vmatpush1.msra.mxu0 %v1362_v27  ;;  %1469 = vmatprep.subr.mxu1 %v3000_v33 }
  0x77   : > { %1564 = vmatprep.subr.mxu0 %v1361_v29  ;;  %1470 = vmatpush1.msra.mxu1 %v2999_v40  ;;  %v1351_v29 = vld [vmem:[%s5431_s3 + $0x28] sm:$0xff]  ;;  %v1349_v40 = vld [vmem:[%s5431_s3 + $0x18] sm:$0xff] }
  0x78   : > { %1565 = vmatpush1.msra.mxu0 %v1360_v34 }
  0x79   : > { %1566 = vmatprep.subr.mxu0 %v1359_v41 }
  0xee   : > { %v524_v43 = vpop.f32.mrf.mxu0 }
  0xef   : > { %v621_v44 = vpop.f32.mrf.mxu1 }
  0xf0   : > { %v526_v45 = vpop.f32.mrf.mxu0  ;;  %v622_v8 = vadd.f32 %v621_v44, %v524_v43 }
  0xf1   : > { %v623_v47 = vpop.f32.mrf.mxu1 }
  0xf2   : > { %v624_v19 = vadd.f32 %v623_v47, %v526_v45  ;;  %v1358_v47 = vld [vmem:[%s5431_s3 + $0x60] sm:$0xff] }
  0xf3   : > { %1567 = vmatpush1.msra.mxu0 %v1358_v47 }
  0xfa   : > { %v530_v46 = vpop.f32.mrf.mxu0 }
  0xfb   : > { %v627_v49 = vpop.f32.mrf.mxu1 }
  0xfc   : > { %v532_v48 = vpop.f32.mrf.mxu0  ;;  %v628_v38 = vadd.f32 %v627_v49, %v530_v46  ;;  %v2998_v46 = vld [vmem:[%s5431_s3 + $0x1e8] sm:$0xff] }
  0xfd   : > { %v629_v51 = vpop.f32.mrf.mxu1  ;;  %1471 = vmatprep.subr.mxu1 %v2998_v46 }
  0xfe   : > { %v630_v30 = vadd.f32 %v629_v51, %v532_v48  ;;  %v2997_v51 = vld [vmem:[%s5431_s3 + $0x1e0] sm:$0xff] }
  0xff   : > { %1472 = vmatpush1.msra.mxu1 %v2997_v51  ;;  %v1347_v51 = vld [vmem:[%s5431_s3 + $0x8] sm:$0xff] }
 0x100   : > { %v536_v50 = vpop.f32.mrf.mxu0 }
 0x101   : > { %v633_v54 = vpop.f32.mrf.mxu1 }
 0x102   : > { %v4062_v52 = vpop.f32.mrf.mxu0  ;;  %v634_v35 = vadd.f32 %v633_v54, %v536_v50  ;;  %v1357_v54 = vld [vmem:[%s5431_s3 + $0x58] sm:$0xff] }
 0x103   : > { %v4068_v57 = vpop.f32.mrf.mxu1  ;;  %1568 = vmatprep.subr.mxu0 %v1357_v54  ;;  %v2986_v54 = vld [vmem:[%s5431_s3 + $0x188] sm:$0xff] }
 0x104   : > { %v636_v48 = vadd.f32 %v4068_v57, %v4062_v52  ;;  %v2996_v52 = vld [vmem:[%s5431_s3 + $0x1d8] sm:$0xff]  ;;  %v1356_v57 = vld [vmem:[%s5431_s3 + $0x50] sm:$0xff] }
 0x105   : > { %1473 = vmatprep.subr.mxu1 %v2996_v52  ;;  %1569 = vmatpush1.msra.mxu0 %v1356_v57  ;;  %v1346_v52 = vld [vmem:[%s5431_s3] sm:$0xff] }
 0x106   : > { %v4064_v55 = vpop.f32.mrf.mxu0  ;;  %v2985_v57 = vld [vmem:[%s5431_s3 + $0x180] sm:$0xff] }
 0x107   : > { %v4070_v59 = vpop.f32.mrf.mxu1 }
 0x108   : > { %v4066_v56 = vpop.f32.mrf.mxu0 }
 0x109   : > { %v4072_v61 = vpop.f32.mrf.mxu1 }
 0x10d   : > { %v751_v58 = vpop.f32.mrf.mxu0 }
 0x10e   : > { %v774_v20 = vadd.f32 %v751_v58, %v622_v8 }
 0x10f   : > { %v753_v60 = vpop.f32.mrf.mxu0 }
 0x110   : > { %v889_v63 = vpop.f32.mrf.mxu1  ;;  %v775_v39 = vadd.f32 %v753_v60, %v624_v19 }
 0x111   : > { %v912_v31 = vadd.f32 %v889_v63, %v774_v20  ;;  %v640_v63 = vadd.f32 %v4070_v59, %v4064_v55  ;;  %v1353_v20 = vld [vmem:[%s5431_s3 + $0x38] sm:$0xff] }
 0x112   : > { %v757_v62 = vpop.f32.mrf.mxu0  ;;  %v891_v2 = vpop.f32.mrf.mxu1 }
 0x113   : > { %v776_v32 = vadd.f32 %v757_v62, %v628_v38  ;;  %v913_v42 = vadd.f32 %v891_v2, %v775_v39  ;;  %v1352_v38 = vld [vmem:[%s5431_s3 + $0x30] sm:$0xff] }
 0x114   : > { %v759_v1 = vpop.f32.mrf.mxu0  ;;  %v4076_v5 = vpop.f32.mrf.mxu1 }
 0x115   : > { %v777_v43 = vadd.f32 %v759_v1, %v630_v30  ;;  %v914_v58 = vadd.f32 %v4076_v5, %v776_v32  ;;  %v1355_v5 = vld [vmem:[%s5431_s3 + $0x48] sm:$0xff]  ;;  %v1350_v32 = vld [vmem:[%s5431_s3 + $0x20] sm:$0xff] }
 0x116   : > { %v4083_v9 = vpop.f32.mrf.mxu1  ;;  %1570 = vmatprep.subr.mxu0 %v1355_v5  ;;  %v1386_v5 = vld [vmem:[%s5431_s3 + $0x140] sm:$0x3] }
 0x117   : > { %v4074_v3 = vpop.f32.mrf.mxu0  ;;  %v915_v8 = vadd.f32 %v4083_v9, %v777_v43  ;;  %v1354_v9 = vld [vmem:[%s5431_s3 + $0x40] sm:$0xff]  ;;  %v2988_v43 = vld [vmem:[%s5431_s3 + $0x198] sm:$0xff] }
 0x118   : > { %v901_v25 = vpop.f32.mrf.mxu1  ;;  %v778_v49 = vadd.f32 %v4074_v3, %v634_v35  ;;  %v2995_v3 = vld [vmem:[%s5431_s3 + $0x1d0] sm:$0xff]  ;;  %1571 = vmatpush1.msra.mxu0 %v1354_v9  ;;  %v1382_v9 = vld [vmem:[%s5431_s3 + $0x120] sm:$0xff] }
 0x119   : > { %v4078_v6 = vpop.f32.mrf.mxu0  ;;  %1474 = vmatpush1.msra.mxu1 %v2995_v3  ;;  %1572 = vmatprep.subr.mxu0 %v1353_v20  ;;  %v2984_v3 = vld [vmem:[%s5431_s3 + $0x178] sm:$0xff]  ;;  %v1380_v20 = vld [vmem:[%s5431_s3 + $0x110] sm:$0xff] }
 0x11a   : > { %v903_v44 = vpop.f32.mrf.mxu1  ;;  %v779_v1 = vadd.f32 %v4078_v6, %v636_v48  ;;  %v642_v6 = vadd.f32 %v4072_v61, %v4066_v56  ;;  %v916_v13 = vadd.f32 %v901_v25, %v778_v49  ;;  %1475 = vmatprep.subr.mxu1 %v2994_v17  ;;  %v2993_v61 = vld [vmem:[%s5431_s3 + $0x1c0] sm:$0xff]  ;;  %1573 = vmatpush1.msra.mxu0 %v1352_v38  ;;  %v1348_v48 = vld [vmem:[%s5431_s3 + $0x10] sm:$0xff]  ;;  %v2980_v17 = vld [vmem:[%s5431_s3 + $0x158] sm:$0xff] }
 0x11b   : > { %v4094_v14 = vpop.f32.mrf.mxu0  ;;  %1476 = vmatpush1.msra.mxu1 %v2993_v61  ;;  %1574 = vmatprep.subr.mxu0 %v1351_v29  ;;  %v2987_v49 = vld [vmem:[%s5431_s3 + $0x190] sm:$0xff]  ;;  %v3020_v61 = vld [vmem:[%s5431_s3 + $0x298] sm:$0x3]  ;;  %v3017_v38 = vld [vmem:[%s5431_s3 + $0x280] sm:$0xff] }
 0x11c   : > { %v907_v10 = vpop.f32.mrf.mxu1  ;;  %v780_v18 = vadd.f32 %v4094_v14, %v640_v63  ;;  %v917_v21 = vadd.f32 %v903_v44, %v779_v1  ;;  %1477 = vmatprep.subr.mxu1 %v2992_v23  ;;  %1575 = vmatpush1.msra.mxu0 %v1350_v32  ;;  %v1378_v23 = vld [vmem:[%s5431_s3 + $0x100] sm:$0xff]  ;;  %v3014_v29 = vld [vmem:[%s5431_s3 + $0x268] sm:$0xff]  ;;  %v3011_v32 = vld [vmem:[%s5431_s3 + $0x250] sm:$0xff] }
 0x11d   : > { %v4122_v0 = vpop.f32.mrf.mxu0  ;;  %1478 = vmatpush1.msra.mxu1 %v2991_v28  ;;  %1576 = vmatprep.subr.mxu0 %v1349_v40  ;;  %v3015_v28 = vld [vmem:[%s5431_s3 + $0x270] sm:$0xff] }
 0x11e   : > { %v781_v14 = vadd.f32 %v4122_v0, %v642_v6  ;;  %v909_v39 = vpop.f32.mrf.mxu1  ;;  %v918_v33 = vadd.f32 %v907_v10, %v780_v18  ;;  %1577 = vmatpush1.msra.mxu0 %v1348_v48  ;;  %v2982_v10 = vld [vmem:[%s5431_s3 + $0x168] sm:$0xff]  ;;  %v2979_v18 = vld [vmem:[%s5431_s3 + $0x150] sm:$0xff] }
 0x11f   : > { %1578 = vmatprep.subr.mxu0 %v1347_v51 }
 0x120   : > { %v919_v41 = vadd.f32 %v909_v39, %v781_v14  ;;  %1579 = vmatpush1.msra.mxu0 %v1346_v52  ;;  %v1379_v14 = vld [vmem:[%s5431_s3 + $0x108] sm:$0xff] }
 0x121   : > { %v3106_v39 = vld [vmem:[%s5431_s3 + $0x4e8] sm:$0xff] }
 0x127   : > { %v1027_v36 = vpop.f32.mrf.mxu0 }
 0x128   : > { %v1050_v45 = vadd.f32 %v1027_v36, %v912_v31  ;;  %v2990_v31 = vld [vmem:[%s5431_s3 + $0x1a8] sm:$0xff]  ;;  %v2989_v36 = vld [vmem:[%s5431_s3 + $0x1a0] sm:$0xff] }
 0x129   : > { %v1029_v50 = vpop.f32.mrf.mxu0  ;;  %1479 = vmatprep.subr.mxu1 %v2990_v31  ;;  %v3012_v31 = vld [vmem:[%s5431_s3 + $0x258] sm:$0xff] }
 0x12a   : > { %v1051_v60 = vadd.f32 %v1029_v50, %v913_v42  ;;  %v4167_v62 = vadd.f32 %v4126_v12, %v1050_v45  ;;  %1480 = vmatpush1.msra.mxu1 %v2989_v36  ;;  %v3445_v36 = vmov 1966171168  }
 0x12b   : > { %v1033_v2 = vpop.f32.mrf.mxu0  ;;  %1481 = vmatprep.subr.mxu1 %v2988_v43  ;;  %v1143_v40 = vunpack.c.l.s4 %v3445_v36 }
 0x12c   : > { %v4186_v11 = vadd.f32 %v4142_v37, %v1051_v60  ;;  %v1052_v55 = vadd.f32 %v1033_v2, %v914_v58  ;;  %v1078_v59 = vmax.f32 %v4167_v62, 0.0  ;;  %1482 = vmatpush1.msra.mxu1 %v2987_v49  ;;  %v1387_v2 = vld [vmem:[%s5431_s3 + $0x148] sm:$0x3] }
 0x12d   : > { %v1035_v16 = vpop.f32.mrf.mxu0  ;;  %1483 = vmatprep.subr.mxu1 %v2986_v54  ;;  %3025 = vmatprep.subr.msk.mxu0 %vm1452_vm5, %v1387_v2  ;;  %v1144_v48 = vunpack.c.0.s8 %v1143_v40 }
 0x12e   : > { %v1053_v19 = vadd.f32 %v1035_v16, %v915_v8  ;;  %1094 = vrot.lane.b32.xlu0 %v1078_v59, %s3444_s29  ;;  %v4202_v56 = vadd.f32 %v4126_v12, %v1052_v55  ;;  %v1079_v25 = vmax.f32 %v4186_v11, 0.0  ;;  %1484 = vmatpush1.msra.mxu1 %v2985_v57  ;;  %v1385_v8 = vld [vmem:[%s5431_s3 + $0x138] sm:$0xff]  ;;  %v1384_v55 = vld [vmem:[%s5431_s3 + $0x130] sm:$0xff]  ;;  %v1383_v16 = vld [vmem:[%s5431_s3 + $0x128] sm:$0xff] }
 0x12f   : > { %v1039_v22 = vpop.f32.mrf.mxu0  ;;  %1485 = vmatprep.subr.mxu1 %v2984_v3  ;;  %3026 = vmatpush2.msk.msra.mxu0 %vm1452_vm5, %v1386_v5  ;;  %v4396_v2 = vsub.s32 %v1144_v48, %v4081_v7 }
 0x130   : > { %v4219_v26 = vadd.f32 %v4142_v37, %v1053_v19  ;;  %v1054_v27 = vadd.f32 %v1039_v22, %v916_v13  ;;  %v1080_v0 = vmax.f32 %v4202_v56, 0.0  ;;  %v2981_v13 = vld [vmem:[%s5431_s3 + $0x160] sm:$0xff]  ;;  %1604 = vmatprep.subr.mxu0 %v1385_v8  ;;  %v1381_v19 = vld [vmem:[%s5431_s3 + $0x118] sm:$0xff]  ;;  %v3018_v22 = vld [vmem:[%s5431_s3 + $0x288] sm:$0xff] }
 0x131   : > { %v1041_v30 = vpop.f32.mrf.mxu0  ;;  %1605 = vmatpush2.msra.mxu0 %v1384_v55 }
 0x132   : > { %v4235_v34 = vadd.f32 %v4126_v12, %v1054_v27  ;;  %v1055_v35 = vadd.f32 %v1041_v30, %v917_v21  ;;  %1096 = vrot.lane.b32.xlu0 %v1079_v25, %s3444_s29  ;;  %1098 = vrot.lane.b32.xlu1 %v1080_v0, %s3444_s29  ;;  %v1081_v44 = vmax.f32 %v4219_v26, 0.0  ;;  %v3019_v21 = vld [vmem:[%s5431_s3 + $0x290] sm:$0x3]  ;;  %v3016_v27 = vld [vmem:[%s5431_s3 + $0x278] sm:$0xff] }
 0x133   : > { %v1045_v42 = vpop.f32.mrf.mxu0  ;;  %1606 = vmatprep.subr.mxu0 %v1383_v16  ;;  %v3013_v30 = vld [vmem:[%s5431_s3 + $0x260] sm:$0xff] }
 0x134   : > { %v1082_v45 = vmax.f32 %v4235_v34, 0.0  ;;  %v4255_v46 = vadd.f32 %v4142_v37, %v1055_v35  ;;  %v1056_v47 = vadd.f32 %v1045_v42, %v918_v33  ;;  %1607 = vmatpush2.msra.mxu0 %v1382_v9  ;;  %v3060_v33 = vld [vmem:[%s5431_s3 + $0x398] sm:$0xff] }
 0x135   : > { %v1047_v50 = vpop.f32.mrf.mxu0  ;;  %1608 = vmatprep.subr.mxu0 %v1381_v19 }
 0x136   : > { %v4270_v58 = vadd.f32 %v4126_v12, %v1056_v47  ;;  %v1057_v60 = vadd.f32 %v1047_v50, %v919_v41  ;;  %1100 = vrot.lane.b32.xlu1 %v1081_v44, %s3444_s29  ;;  %1102 = vrot.lane.b32.xlu0 %v1082_v45, %s3444_s29  ;;  %v1083_v12 = vmax.f32 %v4255_v46, 0.0 }
 0x137   : > { %1609 = vmatpush2.msra.mxu0 %v1380_v20 }
 0x138   : > { %v1084_v63 = vmax.f32 %v4270_v58, 0.0  ;;  %v4287_v1 = vadd.f32 %v4142_v37, %v1057_v60  ;;  %v2983_v37 = vld [vmem:[%s5431_s3 + $0x170] sm:$0xff]  ;;  %1610 = vmatprep.subr.mxu0 %v1379_v14 }
 0x139   : > { %1486 = vmatpush1.msra.mxu1 %v2983_v37  ;;  %1611 = vmatpush2.msra.mxu0 %v1378_v23 }
 0x13a   : > { %1104 = vrot.lane.b32.xlu1 %v1083_v12, %s3444_s29  ;;  %1106 = vrot.lane.b32.xlu0 %v1084_v63, %s3444_s29  ;;  %v1085_v6 = vmax.f32 %v4287_v1, 0.0 }
 0x13b   : > { %1487 = vmatprep.subr.mxu1 %v2982_v10  ;;  %1844 = vmatprep.subr.mxu0 %v3106_v39 }
 0x13c   : > { %1488 = vmatpush1.msra.mxu1 %v2981_v13 }
 0x13d   : > { %1489 = vmatprep.subr.mxu1 %v2980_v17 }
 0x13e   : > { %1108 = vrot.lane.b32.xlu1 %v1085_v6, %s3444_s29  ;;  %1490 = vmatpush1.msra.mxu1 %v2979_v18  ;;  %s3446_s29 = smov 112  }
 0x13f   : > { %3021 = vmatprep.subr.msk.mxu1 %vm1452_vm5, %v3020_v61 }
 0x140   : > { %3022 = vmatpush2.msk.msra.mxu1 %vm1452_vm5, %v3019_v21 }
 0x141   : > { %1515 = vmatprep.subr.mxu1 %v3018_v22 }
 0x142   : > { %1516 = vmatpush2.msra.mxu1 %v3017_v38 }
 0x143   : > { %1517 = vmatprep.subr.mxu1 %v3016_v27 }
 0x144   : > { %1518 = vmatpush2.msra.mxu1 %v3015_v28 }
 0x145   : > { %1519 = vmatprep.subr.mxu1 %v3014_v29 }
 0x146   : > { %1520 = vmatpush2.msra.mxu1 %v3013_v30 }
 0x147   : > { %1521 = vmatprep.subr.mxu1 %v3012_v31 }
 0x148   : > { %1522 = vmatpush2.msra.mxu1 %v3011_v32 }
 0x149   : > { %1694 = vmatprep.subr.mxu1 %v3060_v33 }
 0x1a0   : > { %v1095_v35 = vpop.permute.xlu0 %1094 }
 0x1a4   : > { %v1097_v41 = vpop.permute.xlu0 %1096  ;;  %v1099_v42 = vpop.permute.xlu1 %1098 }
 0x1a5   : > { %v1111_v43 = vsel %vm1110_vm6, %v1095_v35, %v1097_v41  ;;  %v1124_v47 = vmax.f32 %v1079_v25, %v1097_v41 }
 0x1a6   : > { %v1123_v49 = vmax.f32 %v1078_v59, %v1111_v43 }
 0x1a7   : > { %v1134_v50 = vrot.slane %v1124_v47, 1 }
 0x1a8   : > { %v1133_v51 = vrot.slane %v1123_v49, 1  ;;  %v1101_v54 = vpop.permute.xlu1 %1100  ;;  %v1103_v25 = vpop.permute.xlu0 %1102 }
 0x1a9   : > { %v1138_v60 = vmax.f32 %v1124_v47, %v1134_v50  ;;  %v1112_v52 = vsel %vm1110_vm6, %v1099_v42, %v1101_v54  ;;  %v1126_v57 = vmax.f32 %v1081_v44, %v1101_v54  ;;  %v3105_v54 = vld [vmem:[%s5431_s3 + $0x4e0] sm:$0xff] }
 0x1aa   : > { %v1137_v3 = vmax.f32 %v1123_v49, %v1133_v51  ;;  %v1125_v11 = vmax.f32 %v1080_v0, %v1112_v52  ;;  %v3103_v52 = vld [vmem:[%s5431_s3 + $0x4d0] sm:$0xff] }
 0x1ab   : > { %v1195_v5 = vrot.slane %v1126_v57, 1  ;;  %v3059_v0 = vld [vmem:[%s5431_s3 + $0x390] sm:$0xff] }
 0x1ac   : > { %v1141_v62 = vcombine.low %v1137_v3, %v1138_v60  ;;  %v1168_v59 = vcombine.high %v1137_v3, %v1138_v60  ;;  %v1194_v37 = vrot.slane %v1125_v11, 1  ;;  %v1105_v8 = vpop.permute.xlu1 %1104  ;;  %v1107_v19 = vpop.permute.xlu0 %1106  ;;  %v3104_v60 = vld [vmem:[%s5431_s3 + $0x4d8] sm:$0xff]  ;;  %v3101_v3 = vld [vmem:[%s5431_s3 + $0x4c0] sm:$0xff] }
 0x1ad   : > { %v1199_v10 = vmax.f32 %v1126_v57, %v1195_v5  ;;  %v1113_v55 = vsel %vm1110_vm6, %v1103_v25, %v1105_v8  ;;  %v1128_v26 = vmax.f32 %v1083_v12, %v1105_v8  ;;  %v3102_v57 = vld [vmem:[%s5431_s3 + $0x4c8] sm:$0xff] }
 0x1ae   : > { %v1148_v44 = vrot.slane %v1141_v62, %v4396_v2  ;;  %v1175_v13 = vrot.slane %v1168_v59, %v4396_v2  ;;  %v1198_v16 = vmax.f32 %v1125_v11, %v1194_v37  ;;  %v1127_v56 = vmax.f32 %v1082_v45, %v1113_v55  ;;  %v3100_v37 = vld [vmem:[%s5431_s3 + $0x4b8] sm:$0xff] }
 0x1af   : > { %v1253_v17 = vrot.slane %v1128_v26, 1 }
 0x1b0   : > { %v1155_v9 = vrot.slane %v1148_v44, %v4396_v2  ;;  %v1182_v18 = vrot.slane %v1175_v13, %v4396_v2  ;;  %v1202_v46 = vcombine.low %v1198_v16, %v1199_v10  ;;  %v1226_v12 = vcombine.high %v1198_v16, %v1199_v10  ;;  %v1109_v61 = vpop.permute.xlu1 %1108 }
 0x1b1   : > { %v1252_v20 = vrot.slane %v1127_v56, 1  ;;  %v1257_v21 = vmax.f32 %v1128_v26, %v1253_v17  ;;  %v1114_v14 = vsel %vm1110_vm6, %v1107_v19, %v1109_v61  ;;  %v1130_v34 = vmax.f32 %v1085_v6, %v1109_v61  ;;  %v3099_v26 = vld [vmem:[%s5431_s3 + $0x4b0] sm:$0xff]  ;;  %v3098_v17 = vld [vmem:[%s5431_s3 + $0x4a8] sm:$0xff]  ;;  %v3097_v61 = vld [vmem:[%s5431_s3 + $0x4a0] sm:$0xff] }
 0x1b2   : > { %1161 = vst.msk [vmem:[#allocation2] ss:$8 sm:$0x3] %vm4408_vm7, %v1155_v9  ;;  %v1163_v4 = vcombine.high %v1155_v9, %v1155_v9  ;;  %1185 = vst.msk [vmem:[#allocation2 + $0x2] ss:$8 sm:$0x3] %vm4408_vm7, %v1182_v18  ;;  %v1187_v45 = vcombine.high %v1182_v18, %v1182_v18  ;;  %v1209_v22 = vrot.slane %v1202_v46, %v4396_v2 }
 0x1b3   : > { %v1233_v23 = vrot.slane %v1226_v12, %v4396_v2  ;;  %v1256_v38 = vmax.f32 %v1127_v56, %v1252_v20  ;;  %v1129_v39 = vmax.f32 %v1084_v63, %v1114_v14  ;;  %v1311_v27 = vrot.slane %v1130_v34, 1  ;;  %v3058_v12 = vld [vmem:[%s5431_s3 + $0x388] sm:$0xff]  ;;  %v3096_v14 = vld [vmem:[%s5431_s3 + $0x498] sm:$0xff] }
 0x1b4   : > { %1166 = vst.msk [vmem:[#allocation2 + $0x1] ss:$8 sm:$0x3] %vm4408_vm7, %v1163_v4  ;;  %1190 = vst.msk [vmem:[#allocation2 + $0x3] ss:$8 sm:$0x3] %vm4408_vm7, %v1187_v45  ;;  %v1216_v1 = vrot.slane %v1209_v22, %v4396_v2 }
 0x1b5   : > { %v1240_v6 = vrot.slane %v1233_v23, %v4396_v2  ;;  %v1260_v28 = vcombine.low %v1256_v38, %v1257_v21  ;;  %v1284_v29 = vcombine.high %v1256_v38, %v1257_v21  ;;  %v1310_v30 = vrot.slane %v1129_v39, 1  ;;  %v3057_v21 = vld [vmem:[%s5431_s3 + $0x380] sm:$0xff]  ;;  %v3056_v4 = vld [vmem:[%s5431_s3 + $0x378] sm:$0xff]  ;;  %v3095_v45 = vld [vmem:[%s5431_s3 + $0x490] sm:$0xff] }
 0x1b6   : > { %v1315_v31 = vmax.f32 %v1130_v34, %v1311_v27  ;;  %1219 = vst.msk [vmem:[#allocation2 + $0x4] ss:$8 sm:$0x3] %vm4408_vm7, %v1216_v1  ;;  %v1221_v58 = vcombine.high %v1216_v1, %v1216_v1  ;;  %v3094_v23 = vld [vmem:[%s5431_s3 + $0x488] sm:$0xff]  ;;  %v3055_v38 = vld [vmem:[%s5431_s3 + $0x370] sm:$0xff]  ;;  %v3093_v1 = vld [vmem:[%s5431_s3 + $0x480] sm:$0xff] }
 0x1b7   : > { %1243 = vst.msk [vmem:[#allocation2 + $0x6] ss:$8 sm:$0x3] %vm4408_vm7, %v1240_v6  ;;  %v1245_v63 = vcombine.high %v1240_v6, %v1240_v6  ;;  %v1267_v32 = vrot.slane %v1260_v28, %v4396_v2  ;;  %v1291_v33 = vrot.slane %v1284_v29, %v4396_v2  ;;  %v1314_v35 = vmax.f32 %v1129_v39, %v1310_v30  ;;  %v3054_v27 = vld [vmem:[%s5431_s3 + $0x368] sm:$0xff]  ;;  %v3053_v28 = vld [vmem:[%s5431_s3 + $0x360] sm:$0xff]  ;;  %v3092_v29 = vld [vmem:[%s5431_s3 + $0x478] sm:$0xff] }
 0x1b8   : > { %1224 = vst.msk [vmem:[#allocation2 + $0x5] ss:$8 sm:$0x3] %vm4408_vm7, %v1221_v58  ;;  %v3052_v30 = vld [vmem:[%s5431_s3 + $0x358] sm:$0xff]  ;;  %v3051_v58 = vld [vmem:[%s5431_s3 + $0x350] sm:$0xff] }
 0x1b9   : > { %1248 = vst.msk [vmem:[#allocation2 + $0x7] ss:$8 sm:$0x3] %vm4408_vm7, %v1245_v63  ;;  %v1274_v36 = vrot.slane %v1267_v32, %v4396_v2  ;;  %v1298_v40 = vrot.slane %v1291_v33, %v4396_v2  ;;  %v1318_v41 = vcombine.low %v1314_v35, %v1315_v31  ;;  %v3091_v31 = vld [vmem:[%s5431_s3 + $0x470] sm:$0xff]  ;;  %v3090_v63 = vld [vmem:[%s5431_s3 + $0x468] sm:$0xff]  ;;  %v3089_v33 = vld [vmem:[%s5431_s3 + $0x460] sm:$0xff] }
 0x1ba   : > { %v3050_v32 = vld [vmem:[%s5431_s3 + $0x348] sm:$0xff]  ;;  %v3049_v35 = vld [vmem:[%s5431_s3 + $0x340] sm:$0xff] }
 0x1bb   : > { %1277 = vst.msk [vmem:[#allocation2 + $0x10] ss:$8 sm:$0x3] %vm4408_vm7, %v1274_v36  ;;  %v1279_v42 = vcombine.high %v1274_v36, %v1274_v36  ;;  %1301 = vst.msk [vmem:[#allocation2 + $0x12] ss:$8 sm:$0x3] %vm4408_vm7, %v1298_v40  ;;  %v1303_v43 = vcombine.high %v1298_v40, %v1298_v40  ;;  %v1325_v47 = vrot.slane %v1318_v41, %v4396_v2 }
 0x1bc   : > { %v3088_v36 = vld [vmem:[%s5431_s3 + $0x458] sm:$0xff]  ;;  %v3087_v41 = vld [vmem:[%s5431_s3 + $0x450] sm:$0xff] }
 0x1bd   : > { %1282 = vst.msk [vmem:[#allocation2 + $0x11] ss:$8 sm:$0x3] %vm4408_vm7, %v1279_v42  ;;  %1306 = vst.msk [vmem:[#allocation2 + $0x13] ss:$8 sm:$0x3] %vm4408_vm7, %v1303_v43  ;;  %v1332_v48 = vrot.slane %v1325_v47, %v4396_v2 }
 0x1be   : > { %v3048_v40 = vld [vmem:[%s5431_s3 + $0x338] sm:$0xff]  ;;  %v3047_v42 = vld [vmem:[%s5431_s3 + $0x330] sm:$0xff]  ;;  %v3086_v43 = vld [vmem:[%s5431_s3 + $0x448] sm:$0xff] }
 0x1bf   : > { %1335 = vst.msk [vmem:[#allocation2 + $0x14] ss:$8 sm:$0x3] %vm4408_vm7, %v1332_v48  ;;  %v1337_v49 = vcombine.high %v1332_v48, %v1332_v48  ;;  %v3046_v47 = vld [vmem:[%s5431_s3 + $0x328] sm:$0xff]  ;;  %v3085_v48 = vld [vmem:[%s5431_s3 + $0x440] sm:$0xff] }
 0x1c0   : > { %v1343_v50 = vld [vmem:[#allocation2 + $0x8] sm:$0xff]  ;;  %v1342_v51 = vld [vmem:[#allocation2] sm:$0xff] }
 0x1c1   : > { %3027 = vmatprep.mubr.msk.f32.mxu0 %vm1447_vm8, %v1343_v50  ;;  %1340 = vst.msk [vmem:[#allocation2 + $0x15] ss:$8 sm:$0x3] %vm4408_vm7, %v1337_v49  ;;  %v1389_v2 = vld [vmem:[#allocation2 + $0x8] sm:$0xfe]  ;;  %v3045_v49 = vld [vmem:[%s5431_s3 + $0x320] sm:$0xff] }
 0x1c2   : > { %1613 = vmatmul.mubr.f32.vlgmr.msra.gmra.mxu0 %v1342_v51  ;;  %v1388_v11 = vld [vmem:[#allocation2] sm:$0xfe]  ;;  %v1776_v25 = vld [vmem:[#allocation2 + $0x8] sm:$0xf8]  ;;  %v1442_v8 = vrot.slane %v1389_v2, 1  ;;  %v3084_v50 = vld [vmem:[%s5431_s3 + $0x438] sm:$0xff] }
 0x1c3   : > { %1845 = vmatpush1.msra.mxu0 %v3105_v54  ;;  %v1439_v44 = vrot.slane %v1388_v11, 1  ;;  %v1829_v9 = vrot.slane %v1776_v25, 3  ;;  %v1626_v34 = vld [vmem:[#allocation2 + $0x8] sm:$0xfc]  ;;  %v3044_v51 = vld [vmem:[%s5431_s3 + $0x318] sm:$0xff]  ;;  %v3083_v54 = vld [vmem:[%s5431_s3 + $0x430] sm:$0xff] }
 0x1c4   : > { %1846 = vmatprep.subr.mxu0 %v3104_v60  ;;  %v1345_v5 = vld [vmem:[#allocation2 + $0x18] sm:$0x3]  ;;  %v1344_v62 = vld [vmem:[#allocation2 + $0x10] sm:$0x3]  ;;  %v1679_v39 = vrot.slane %v1626_v34, 2  ;;  %v3081_v2 = vld [vmem:[%s5431_s3 + $0x420] sm:$0xff] }
 0x1c5   : > { %1847 = vmatpush1.msra.mxu0 %v3103_v52  ;;  %v1391_v59 = vld [vmem:[#allocation2 + $0x18] sm:$0x7]  ;;  %3028 = vmatprep.mubr.msk.f32.mxu0 %vm1447_vm8, %v1345_v5  ;;  %v1390_v55 = vld [vmem:[#allocation2 + $0x10] sm:$0x7]  ;;  %v3082_v52 = vld [vmem:[%s5431_s3 + $0x428] sm:$0xff] }
 0x1c6   : > { %1848 = vmatprep.subr.mxu0 %v3102_v57  ;;  %v1443_v10 = vrot.slane %v1391_v59, 1  ;;  %1619 = vmatmul.mubr.f32.gmra.mxu0 %v1344_v62  ;;  %v1440_v13 = vrot.slane %v1390_v55, 1  ;;  %v4480_v16 = vld [vmem:[#allocation2 + $0x18] sm:$0x1f]  ;;  %v3043_v60 = vld [vmem:[%s5431_s3 + $0x310] sm:$0xff]  ;;  %v3042_v57 = vld [vmem:[%s5431_s3 + $0x308] sm:$0xff] }
 0x1c7   : > { %1849 = vmatpush1.msra.mxu0 %v3101_v3  ;;  %v1830_v18 = vrot.slane %v4480_v16, 3  ;;  %v4495_v19 = vld [vmem:[#allocation2 + $0x18] sm:$0xf]  ;;  %v3041_v3 = vld [vmem:[%s5431_s3 + $0x300] sm:$0xff]  ;;  %v3079_v5 = vld [vmem:[%s5431_s3 + $0x410] sm:$0xff] }
 0x1c8   : > { %v1444_v56 = vsel %vm441_vm0, %v1442_v8, %v1443_v10  ;;  %1850 = vmatprep.subr.mxu0 %v3100_v37  ;;  %v1441_v46 = vsel %vm441_vm0, %v1439_v44, %v1440_v13  ;;  %v1680_v22 = vrot.slane %v4495_v19, 2  ;;  %v3080_v11 = vld [vmem:[%s5431_s3 + $0x418] sm:$0xff]  ;;  %v3039_v62 = vld [vmem:[%s5431_s3 + $0x2f0] sm:$0xff]  ;;  %v3078_v59 = vld [vmem:[%s5431_s3 + $0x408] sm:$0xff] }
 0x1c9   : > { %3023 = vmatprep.mubr.msk.f32.mxu1 %vm1447_vm8, %v1444_v56  ;;  %1851 = vmatpush1.msra.mxu0 %v3099_v26  ;;  %v1831_v20 = vsel %vm807_vm3, %v1829_v9, %v1830_v18  ;;  %v3040_v25 = vld [vmem:[%s5431_s3 + $0x2f8] sm:$0xff]  ;;  %v3038_v37 = vld [vmem:[%s5431_s3 + $0x2e8] sm:$0xff]  ;;  %v3077_v8 = vld [vmem:[%s5431_s3 + $0x400] sm:$0xff] }
 0x1ca   : > { %1524 = vmatmul.mubr.f32.vlgmr.msra.gmra.mxu1 %v1441_v46  ;;  %1852 = vmatprep.subr.mxu0 %v3098_v17  ;;  %v1681_v6 = vsel %vm669_vm2, %v1679_v39, %v1680_v22  ;;  %v3076_v55 = vld [vmem:[%s5431_s3 + $0x3f8] sm:$0xff]  ;;  %v3075_v44 = vld [vmem:[%s5431_s3 + $0x3f0] sm:$0xff]  ;;  %v3033_v9 = vld [vmem:[%s5431_s3 + $0x2c0] sm:$0xff] }
 0x1cb   : > { %1695 = vmatpush1.msra.mxu1 %v3059_v0  ;;  %3024 = vmatprep.mubr.msk.f32.mxu1 %vm1447_vm8, %v1443_v10  ;;  %v3037_v10 = vld [vmem:[%s5431_s3 + $0x2e0] sm:$0xff]  ;;  %v3036_v26 = vld [vmem:[%s5431_s3 + $0x2d8] sm:$0xff]  ;;  %v3034_v0 = vld [vmem:[%s5431_s3 + $0x2c8] sm:$0xff] }
 0x1cc   : > { %1696 = vmatprep.subr.mxu1 %v3058_v12  ;;  %1853 = vmatpush1.msra.mxu0 %v3097_v61  ;;  %v3116_v56 = vld [vmem:[%s5431_s3 + $0x538] sm:$0x3]  ;;  %v3115_v17 = vld [vmem:[%s5431_s3 + $0x530] sm:$0x3]  ;;  %v3114_v46 = vld [vmem:[%s5431_s3 + $0x528] sm:$0xff] }
 0x1cd   : > { %3119 = vmatprep.mubr.msk.f32.mxu0 %vm1447_vm8, %v1831_v20  ;;  %1697 = vmatpush1.msra.mxu1 %v3057_v21  ;;  %v3032_v12 = vld [vmem:[%s5431_s3 + $0x2b8] sm:$0xff]  ;;  %v3113_v61 = vld [vmem:[%s5431_s3 + $0x520] sm:$0xff]  ;;  %v3031_v20 = vld [vmem:[%s5431_s3 + $0x2b0] sm:$0xff] }
 0x1ce   : > { %1854 = vmatprep.subr.mxu0 %v3096_v14  ;;  %1698 = vmatprep.subr.mxu1 %v3056_v4  ;;  %v3112_v21 = vld [vmem:[%s5431_s3 + $0x518] sm:$0xff]  ;;  %v3030_v14 = vld [vmem:[%s5431_s3 + $0x2a8] sm:$0xff]  ;;  %v3111_v34 = vld [vmem:[%s5431_s3 + $0x510] sm:$0xff] }
 0x1cf   : > { %1855 = vmatpush1.msra.mxu0 %v3095_v45  ;;  %1530 = vmatmul.mubr.f32.gmra.mxu1 %v1440_v13  ;;  %v3035_v13 = vld [vmem:[%s5431_s3 + $0x2d0] sm:$0xff]  ;;  %v3029_v45 = vld [vmem:[%s5431_s3 + $0x2a0] sm:$0xff] }
 0x1d0   : > { %1856 = vmatprep.subr.mxu0 %v3094_v23  ;;  %1699 = vmatpush1.msra.mxu1 %v3055_v38  ;;  %v1777_v4 = vld [vmem:[#allocation2 + $0x10] sm:$0x1f]  ;;  %v3110_v23 = vld [vmem:[%s5431_s3 + $0x508] sm:$0xff]  ;;  %v3109_v39 = vld [vmem:[%s5431_s3 + $0x500] sm:$0xff] }
 0x1d1   : > { %3073 = vmatprep.mubr.msk.f32.mxu1 %vm1447_vm8, %v1681_v6  ;;  %1700 = vmatprep.subr.mxu1 %v3054_v27  ;;  %v3070_v38 = vld [vmem:[%s5431_s3 + $0x3e8] sm:$0x3]  ;;  %v1775_v27 = vld [vmem:[#allocation2] sm:$0xf8]  ;;  %v3108_v6 = vld [vmem:[%s5431_s3 + $0x4f8] sm:$0xff] }
 0x1d2   : > { %1857 = vmatpush1.msra.mxu0 %v3093_v1  ;;  %1701 = vmatpush1.msra.mxu1 %v3053_v28  ;;  %v3069_v1 = vld [vmem:[%s5431_s3 + $0x3e0] sm:$0x3]  ;;  %v1827_v28 = vrot.slane %v1777_v4, 3  ;;  %v3122_v4 = vld [vmem:[%s5431_s3 + $0x548] sm:$0xff] }
 0x1d3   : > { %1858 = vmatprep.subr.mxu0 %v3092_v29  ;;  %1702 = vmatprep.subr.mxu1 %v3052_v30  ;;  %v3068_v29 = vld [vmem:[%s5431_s3 + $0x3d8] sm:$0xff]  ;;  %v3107_v30 = vld [vmem:[%s5431_s3 + $0x4f0] sm:$0xff]  ;;  %v3061_v16 = vld [vmem:[%s5431_s3 + $0x3a0] sm:$0xff] }
 0x1d4   : > { %1859 = vmatpush1.msra.mxu0 %v3091_v31  ;;  %1703 = vmatpush1.msra.mxu1 %v3051_v58  ;;  %v3067_v31 = vld [vmem:[%s5431_s3 + $0x3d0] sm:$0xff]  ;;  %v1826_v58 = vrot.slane %v1775_v27, 3 }
 0x1d5   : > { %1860 = vmatprep.subr.mxu0 %v3090_v63  ;;  %1704 = vmatprep.subr.mxu1 %v3050_v32  ;;  %v3066_v63 = vld [vmem:[%s5431_s3 + $0x3c8] sm:$0xff]  ;;  %v3159_v27 = vld [vmem:[%s5431_s3 + $0x670] sm:$0xff] }
 0x1d6   : > { %1861 = vmatpush1.msra.mxu0 %v3089_v33  ;;  %1705 = vmatpush1.msra.mxu1 %v3049_v35  ;;  %v1828_v32 = vsel %vm807_vm3, %v1826_v58, %v1827_v28  ;;  %v3065_v33 = vld [vmem:[%s5431_s3 + $0x3c0] sm:$0xff]  ;;  %v1627_v35 = vld [vmem:[#allocation2 + $0x10] sm:$0xf]  ;;  %v3154_v58 = vld [vmem:[%s5431_s3 + $0x648] sm:$0xff] }
 0x1d7   : > { %1862 = vmatprep.subr.mxu0 %v3088_v36  ;;  %1706 = vmatprep.subr.mxu1 %v3048_v40  ;;  %v3064_v36 = vld [vmem:[%s5431_s3 + $0x3b8] sm:$0xff]  ;;  %v3063_v40 = vld [vmem:[%s5431_s3 + $0x3b0] sm:$0xff] }
 0x1d8   : > { %1863 = vmatpush1.msra.mxu0 %v3087_v41  ;;  %1707 = vmatpush1.msra.mxu1 %v3047_v42  ;;  %v1625_v41 = vld [vmem:[#allocation2] sm:$0xfc]  ;;  %v3062_v42 = vld [vmem:[%s5431_s3 + $0x3a8] sm:$0xff] }
 0x1d9   : > { %1864 = vmatprep.subr.mxu0 %v3086_v43  ;;  %1708 = vmatprep.subr.mxu1 %v3046_v47  ;;  %v1677_v43 = vrot.slane %v1627_v35, 2  ;;  %v3152_v47 = vld [vmem:[%s5431_s3 + $0x638] sm:$0xff] }
 0x1da   : > { %1865 = vmatpush1.msra.mxu0 %v3085_v48  ;;  %1709 = vmatpush1.msra.mxu1 %v3045_v49  ;;  %v4735_v48 = vld [vmem:[#allocation2 + $0x18] sm:$0x3f]  ;;  %v3151_v49 = vld [vmem:[%s5431_s3 + $0x630] sm:$0xff] }
 0x1db   : > { %1866 = vmatprep.subr.mxu0 %v3084_v50  ;;  %1710 = vmatprep.subr.mxu1 %v3044_v51  ;;  %v3150_v51 = vld [vmem:[%s5431_s3 + $0x628] sm:$0xff] }
 0x1dc   : > { %1867 = vmatpush1.msra.mxu0 %v3083_v54  ;;  %1711 = vmatpush1.msra.mxu1 %v3043_v60  ;;  %v1926_v54 = vld [vmem:[#allocation2 + $0x8] sm:$0xf0]  ;;  %v3149_v60 = vld [vmem:[%s5431_s3 + $0x620] sm:$0xff] }
 0x1dd   : > { %1868 = vmatprep.subr.mxu0 %v3082_v52  ;;  %1712 = vmatprep.subr.mxu1 %v3042_v57  ;;  %v1980_v52 = vrot.slane %v4735_v48, 4  ;;  %v3148_v57 = vld [vmem:[%s5431_s3 + $0x618] sm:$0xff] }
 0x1de   : > { %1869 = vmatpush1.msra.mxu0 %v3081_v2  ;;  %1713 = vmatpush1.msra.mxu1 %v3041_v3  ;;  %v3147_v2 = vld [vmem:[%s5431_s3 + $0x610] sm:$0xff]  ;;  %v1979_v3 = vrot.slane %v1926_v54, 4  ;;  %v2146_v48 = vld [vmem:[%s5433_s5 + $0x58] sm:$0xff]  ;;  %v2144_v54 = vld [vmem:[%s5433_s5 + $0x48] sm:$0xff] }
 0x1df   : > { %1870 = vmatprep.subr.mxu0 %v3080_v11  ;;  %1714 = vmatprep.subr.mxu1 %v3040_v25  ;;  %v3146_v11 = vld [vmem:[%s5431_s3 + $0x608] sm:$0xff]  ;;  %v3144_v25 = vld [vmem:[%s5431_s3 + $0x5f8] sm:$0xff] }
 0x1e0   : > { %1871 = vmatpush1.msra.mxu0 %v3079_v5  ;;  %1715 = vmatpush1.msra.mxu1 %v3039_v62  ;;  %v1981_v19 = vsel %vm945_vm4, %v1979_v3, %v1980_v52  ;;  %v3143_v5 = vld [vmem:[%s5431_s3 + $0x5f0] sm:$0xff]  ;;  %v3142_v62 = vld [vmem:[%s5431_s3 + $0x5e8] sm:$0xff] }
 0x1e1   : > { %1872 = vmatprep.subr.mxu0 %v3078_v59  ;;  %1716 = vmatprep.subr.mxu1 %v3038_v37  ;;  %v3141_v59 = vld [vmem:[%s5431_s3 + $0x5e0] sm:$0xff]  ;;  %v3140_v37 = vld [vmem:[%s5431_s3 + $0x5d8] sm:$0xff]  ;;  %v3175_v3 = vld [vmem:[%s5433_s5 + $0xc8] sm:$0xff] }
 0x1e2   : > { %1873 = vmatpush1.msra.mxu0 %v3077_v8  ;;  %1717 = vmatpush1.msra.mxu1 %v3037_v10  ;;  %v3139_v8 = vld [vmem:[%s5431_s3 + $0x5d0] sm:$0xff]  ;;  %v3138_v10 = vld [vmem:[%s5431_s3 + $0x5c8] sm:$0xff] }
 0x1e3   : > { %1874 = vmatprep.subr.mxu0 %v3076_v55  ;;  %1718 = vmatprep.subr.mxu1 %v3036_v26  ;;  %v3137_v55 = vld [vmem:[%s5431_s3 + $0x5c0] sm:$0xff]  ;;  %v3136_v26 = vld [vmem:[%s5431_s3 + $0x5b8] sm:$0xff] }
 0x1e4   : > { %1875 = vmatpush1.msra.mxu0 %v3075_v44  ;;  %1719 = vmatpush1.msra.mxu1 %v3035_v13  ;;  %v3135_v44 = vld [vmem:[%s5431_s3 + $0x5b0] sm:$0xff]  ;;  %v3134_v13 = vld [vmem:[%s5431_s3 + $0x5a8] sm:$0xff] }
 0x1e5   : > { %3117 = vmatprep.subr.msk.mxu0 %vm1452_vm5, %v3116_v56  ;;  %1720 = vmatprep.subr.mxu1 %v3034_v0  ;;  %v3133_v56 = vld [vmem:[%s5431_s3 + $0x5a0] sm:$0xff]  ;;  %v3132_v0 = vld [vmem:[%s5431_s3 + $0x598] sm:$0xff] }
 0x1e6   : > { %3118 = vmatpush2.msk.msra.mxu0 %vm1452_vm5, %v3115_v17  ;;  %1721 = vmatpush1.msra.mxu1 %v3033_v9  ;;  %v3131_v17 = vld [vmem:[%s5431_s3 + $0x590] sm:$0xff]  ;;  %v3130_v9 = vld [vmem:[%s5431_s3 + $0x588] sm:$0xff] }
 0x1e7   : > { %1900 = vmatprep.subr.mxu0 %v3114_v46  ;;  %1722 = vmatprep.subr.mxu1 %v3032_v12  ;;  %v3129_v46 = vld [vmem:[%s5431_s3 + $0x580] sm:$0xff]  ;;  %v3128_v12 = vld [vmem:[%s5431_s3 + $0x578] sm:$0xff] }
 0x1e8   : > { %1901 = vmatpush2.msra.mxu0 %v3113_v61  ;;  %1723 = vmatpush1.msra.mxu1 %v3031_v20  ;;  %v3127_v61 = vld [vmem:[%s5431_s3 + $0x570] sm:$0xff]  ;;  %v3126_v20 = vld [vmem:[%s5431_s3 + $0x568] sm:$0xff] }
 0x1e9   : > { %1902 = vmatprep.subr.mxu0 %v3112_v21  ;;  %1724 = vmatprep.subr.mxu1 %v3030_v14  ;;  %v3125_v21 = vld [vmem:[%s5431_s3 + $0x560] sm:$0xff]  ;;  %v3124_v14 = vld [vmem:[%s5431_s3 + $0x558] sm:$0xff] }
 0x1ea   : > { %1903 = vmatpush2.msra.mxu0 %v3111_v34  ;;  %1725 = vmatpush1.msra.mxu1 %v3029_v45  ;;  %v3123_v34 = vld [vmem:[%s5431_s3 + $0x550] sm:$0xff]  ;;  %v3121_v45 = vld [vmem:[%s5431_s3 + $0x540] sm:$0xff] }
 0x1eb   : > { %1904 = vmatprep.subr.mxu0 %v3110_v23  ;;  %3071 = vmatprep.subr.msk.mxu1 %vm1452_vm5, %v3070_v38  ;;  %v3162_v23 = vld [vmem:[%s5431_s3 + $0x688] sm:$0x3]  ;;  %v3161_v38 = vld [vmem:[%s5431_s3 + $0x680] sm:$0x3] }
 0x1ec   : > { %1905 = vmatpush2.msra.mxu0 %v3109_v39  ;;  %3072 = vmatpush2.msk.msra.mxu1 %vm1452_vm5, %v3069_v1  ;;  %v3160_v39 = vld [vmem:[%s5431_s3 + $0x678] sm:$0xff]  ;;  %v3158_v1 = vld [vmem:[%s5431_s3 + $0x668] sm:$0xff] }
 0x1ed   : > { %1906 = vmatprep.subr.mxu0 %v3108_v6  ;;  %1750 = vmatprep.subr.mxu1 %v3068_v29  ;;  %v3157_v6 = vld [vmem:[%s5431_s3 + $0x660] sm:$0xff]  ;;  %v3156_v29 = vld [vmem:[%s5431_s3 + $0x658] sm:$0xff] }
 0x1ee   : > { %1907 = vmatpush2.msra.mxu0 %v3107_v30  ;;  %1751 = vmatpush2.msra.mxu1 %v3067_v31  ;;  %v3155_v30 = vld [vmem:[%s5431_s3 + $0x650] sm:$0xff]  ;;  %v1925_v31 = vld [vmem:[#allocation2] sm:$0xf0] }
 0x1ef   : > { %1909 = vmatmul.mubr.f32.vlgmr.msra.gmra.mxu0 %v1828_v32  ;;  %1752 = vmatprep.subr.mxu1 %v3066_v63  ;;  %v3153_v32 = vld [vmem:[%s5431_s3 + $0x640] sm:$0xff] }
 0x1f0   : > { %3120 = vmatprep.mubr.msk.f32.mxu0 %vm1447_vm8, %v1830_v18  ;;  %1753 = vmatpush2.msra.mxu1 %v3065_v33  ;;  %v1676_v18 = vrot.slane %v1625_v41, 2  ;;  %v1976_v33 = vrot.slane %v1925_v31, 4  ;;  %v3183_v41 = vld [vmem:[%s5433_s5 + $0x108] sm:$0xff] }
 0x1f1   : > { %2157 = vmatprep.subr.mxu0 %v3443_v53  ;;  %1754 = vmatprep.subr.mxu1 %v3064_v36  ;;  %v2150_v36 = vld [vmem:[%s5433_s5 + $0x78] sm:$0xff] }
 0x1f2   : > { %1755 = vmatpush2.msra.mxu1 %v3063_v40  ;;  %v1678_v50 = vsel %vm669_vm2, %v1676_v18, %v1677_v43  ;;  %v2149_v40 = vld [vmem:[%s5433_s5 + $0x70] sm:$0xff]  ;;  %2158 = vmatpush1.msra.mxu0 %v2150_v36  ;;  %v2147_v18 = vld [vmem:[%s5433_s5 + $0x60] sm:$0xff] }
 0x1f3   : > { %1915 = vmatmul.mubr.f32.gmra.mxu0 %v1827_v28  ;;  %1756 = vmatprep.subr.mxu1 %v3062_v42  ;;  %v1927_v28 = vld [vmem:[#allocation2 + $0x10] sm:$0x3f]  ;;  %v3182_v42 = vld [vmem:[%s5433_s5 + $0x100] sm:$0xff] }
 0x1f4   : > { %1757 = vmatpush2.msra.mxu1 %v3061_v16  ;;  %v1977_v63 = vrot.slane %v1927_v28, 4  ;;  %2159 = vmatprep.subr.mxu0 %v3443_v53  ;;  %v3181_v16 = vld [vmem:[%s5433_s5 + $0xf8] sm:$0xff] }
 0x1f5   : > { %1759 = vmatmul.mubr.f32.vlgmr.msra.gmra.mxu1 %v1678_v50  ;;  %1994 = vmatprep.subr.mxu1 %v3152_v47  ;;  %v3180_v47 = vld [vmem:[%s5433_s5 + $0xf0] sm:$0xff] }
 0x1f6   : > { %3074 = vmatprep.mubr.msk.f32.mxu1 %vm1447_vm8, %v1680_v22  ;;  %1995 = vmatpush1.msra.mxu1 %v3151_v49  ;;  %v3145_v22 = vld [vmem:[%s5431_s3 + $0x600] sm:$0xff]  ;;  %v1978_v35 = vsel %vm945_vm4, %v1976_v33, %v1977_v63  ;;  %v3179_v49 = vld [vmem:[%s5433_s5 + $0xe8] sm:$0xff]  ;;  %v2145_v50 = vld [vmem:[%s5433_s5 + $0x50] sm:$0xff] }
 0x1f7   : > { %1996 = vmatprep.subr.mxu1 %v3150_v51  ;;  %2160 = vmatpush1.msra.mxu0 %v2149_v40  ;;  %v3178_v51 = vld [vmem:[%s5433_s5 + $0xe0] sm:$0xff] }
 0x1f8   : > { %1997 = vmatpush1.msra.mxu1 %v3149_v60  ;;  %2161 = vmatprep.subr.mxu0 %v3443_v53  ;;  %v3177_v60 = vld [vmem:[%s5433_s5 + $0xd8] sm:$0xff] }
 0x1f9   : > { %1765 = vmatmul.mubr.f32.gmra.mxu1 %v1677_v43  ;;  %1998 = vmatprep.subr.mxu1 %v3148_v57  ;;  %v2148_v43 = vld [vmem:[%s5433_s5 + $0x68] sm:$0xff]  ;;  %v3176_v57 = vld [vmem:[%s5433_s5 + $0xd0] sm:$0xff] }
 0x1fa   : > { %1999 = vmatpush1.msra.mxu1 %v3147_v2  ;;  %3165 = vmatprep.mubr.msk.f32.mxu1 %vm1447_vm8, %v1981_v19  ;;  %v2142_v2 = vld [vmem:[%s5433_s5 + $0x38] sm:$0xff]  ;;  %v3174_v19 = vld [vmem:[%s5433_s5 + $0xc0] sm:$0xff] }
 0x1fb   : > { %2000 = vmatprep.subr.mxu1 %v3146_v11  ;;  %2162 = vmatpush1.msra.mxu0 %v2148_v43  ;;  %v2141_v11 = vld [vmem:[%s5433_s5 + $0x30] sm:$0xff] }
 0x1fc   : > { %2001 = vmatpush1.msra.mxu1 %v3145_v22  ;;  %2163 = vmatprep.subr.mxu0 %v3443_v53  ;;  %v2140_v22 = vld [vmem:[%s5433_s5 + $0x28] sm:$0xff] }
 0x1fd   : > { %2002 = vmatprep.subr.mxu1 %v3144_v25  ;;  %2164 = vmatpush1.msra.mxu0 %v2147_v18  ;;  %v3173_v25 = vld [vmem:[%s5433_s5 + $0xb8] sm:$0xff]  ;;  %v3184_v18 = vld [vmem:[%s5433_s5 + $0x110] sm:$0xff] }
 0x1fe   : > { %2003 = vmatpush1.msra.mxu1 %v3143_v5  ;;  %2165 = vmatprep.subr.mxu0 %v3443_v53  ;;  %v2139_v5 = vld [vmem:[%s5433_s5 + $0x20] sm:$0xff] }
 0x1ff   : > { %2004 = vmatprep.subr.mxu1 %v3142_v62  ;;  %2166 = vmatpush1.msra.mxu0 %v2146_v48  ;;  %v3172_v62 = vld [vmem:[%s5433_s5 + $0xb0] sm:$0xff] }
 0x200   : > { %2005 = vmatpush1.msra.mxu1 %v3141_v59  ;;  %2167 = vmatprep.subr.mxu0 %v3443_v53  ;;  %v2138_v59 = vld [vmem:[%s5433_s5 + $0x18] sm:$0xff] }
 0x201   : > { %2006 = vmatprep.subr.mxu1 %v3140_v37  ;;  %2168 = vmatpush1.msra.mxu0 %v2145_v50  ;;  %v3171_v37 = vld [vmem:[%s5433_s5 + $0xa8] sm:$0xff] }
 0x202   : > { %2007 = vmatpush1.msra.mxu1 %v3139_v8  ;;  %2169 = vmatprep.subr.mxu0 %v3443_v53  ;;  %v2137_v8 = vld [vmem:[%s5433_s5 + $0x10] sm:$0xff] }
 0x203   : > { %2008 = vmatprep.subr.mxu1 %v3138_v10  ;;  %2170 = vmatpush1.msra.mxu0 %v2144_v54 }
 0x204   : > { %2009 = vmatpush1.msra.mxu1 %v3137_v55  ;;  %2171 = vmatprep.subr.mxu0 %v3443_v53 }
 0x205   : > { %2010 = vmatprep.subr.mxu1 %v3136_v26 }
 0x206   : > { %2011 = vmatpush1.msra.mxu1 %v3135_v44 }
 0x207   : > { %2012 = vmatprep.subr.mxu1 %v3134_v13 }
 0x208   : > { %2013 = vmatpush1.msra.mxu1 %v3133_v56 }
 0x209   : > { %2014 = vmatprep.subr.mxu1 %v3132_v0 }
 0x20a   : > { %2015 = vmatpush1.msra.mxu1 %v3131_v17 }
 0x20b   : > { %2016 = vmatprep.subr.mxu1 %v3130_v9 }
 0x20c   : > { %2017 = vmatpush1.msra.mxu1 %v3129_v46 }
 0x20d   : > { %2018 = vmatprep.subr.mxu1 %v3128_v12 }
 0x20e   : > { %2019 = vmatpush1.msra.mxu1 %v3127_v61 }
 0x20f   : > { %2020 = vmatprep.subr.mxu1 %v3126_v20  ;;  %v2136_v20 = vld [vmem:[%s5433_s5 + $0x8] sm:$0xff] }
 0x210   : > { %2021 = vmatpush1.msra.mxu1 %v3125_v21  ;;  %v3170_v21 = vld [vmem:[%s5433_s5 + $0xa0] sm:$0xff] }
 0x211   : > { %2022 = vmatprep.subr.mxu1 %v3124_v14 }
 0x212   : > { %2023 = vmatpush1.msra.mxu1 %v3123_v34 }
 0x213   : > { %2024 = vmatprep.subr.mxu1 %v3122_v4 }
 0x214   : > { %2025 = vmatpush1.msra.mxu1 %v3121_v45  ;;  %v2075_v45 = vld [vmem:[%s5432_s4] sm:$0x3] }
 0x215   : > { %3163 = vmatprep.subr.msk.mxu1 %vm1452_vm5, %v3162_v23  ;;  %v2080_v28 = vrot.slane %v2075_v45, %v1062_v15  ;;  %v2084_v15 = vrot.slane %v2075_v45, %v1066_v24  ;;  %v3196_v45 = vld [vmem:[%s5433_s5 + $0x168] sm:$0xff] }
 0x216   : > { %3164 = vmatpush2.msk.msra.mxu1 %vm1452_vm5, %v3161_v38 }
 0x217   : > { %2050 = vmatprep.subr.mxu1 %v3160_v39 }
 0x218   : > { %2051 = vmatpush2.msra.mxu1 %v3159_v27  ;;  %v2135_v27 = vld [vmem:[%s5433_s5] sm:$0xff] }
 0x219   : > { %2052 = vmatprep.subr.mxu1 %v3158_v1  ;;  %v3169_v1 = vld [vmem:[%s5433_s5 + $0x98] sm:$0xff] }
 0x21a   : > { %2053 = vmatpush2.msra.mxu1 %v3157_v6 }
 0x21b   : > { %2054 = vmatprep.subr.mxu1 %v3156_v29 }
 0x21c   : > { %2055 = vmatpush2.msra.mxu1 %v3155_v30 }
 0x21d   : > { %2056 = vmatprep.subr.mxu1 %v3154_v58  ;;  %v2152_v58 = vld [vmem:[%s5433_s5 + $0x88] sm:$0xff] }
 0x21e   : > { %2057 = vmatpush2.msra.mxu1 %v3153_v32 }
 0x21f   : > { %2059 = vmatmul.mubr.f32.vlgmr.msra.gmra.mxu1 %v1978_v35  ;;  %2253 = vmatprep.subr.mxu1 %v3443_v53 }
 0x220   : > { %3166 = vmatprep.mubr.msk.f32.mxu1 %vm1447_vm8, %v1980_v52  ;;  %2254 = vmatpush1.msra.mxu1 %v3183_v41  ;;  %v2143_v52 = vld [vmem:[%s5433_s5 + $0x40] sm:$0xff] }
 0x221   : > { %2255 = vmatprep.subr.mxu1 %v3443_v53  ;;  %2172 = vmatpush1.msra.mxu0 %v2143_v52  ;;  %v2151_v41 = vld [vmem:[%s5433_s5 + $0x80] sm:$0xff] }
 0x222   : > { %2256 = vmatpush1.msra.mxu1 %v3182_v42  ;;  %2173 = vmatprep.subr.mxu0 %v3443_v53  ;;  %v3185_v42 = vld [vmem:[%s5433_s5 + $0x118] sm:$0xff] }
 0x223   : > { %2065 = vmatmul.mubr.f32.gmra.mxu1 %v1977_v63  ;;  %2257 = vmatprep.subr.mxu1 %v3443_v53  ;;  %v3168_v63 = vld [vmem:[%s5433_s5 + $0x90] sm:$0xff] }
 0x224   : > { %2258 = vmatpush1.msra.mxu1 %v3181_v16  ;;  %2174 = vmatpush1.msra.mxu0 %v2142_v2 }
 0x225   : > { %2259 = vmatprep.subr.mxu1 %v3443_v53  ;;  %2175 = vmatprep.subr.mxu0 %v3443_v53 }
 0x226   : > { %2260 = vmatpush1.msra.mxu1 %v3180_v47  ;;  %2176 = vmatpush1.msra.mxu0 %v2141_v11 }
 0x227   : > { %2261 = vmatprep.subr.mxu1 %v3443_v53  ;;  %2177 = vmatprep.subr.mxu0 %v3443_v53 }
 0x228   : > { %2262 = vmatpush1.msra.mxu1 %v3179_v49  ;;  %2178 = vmatpush1.msra.mxu0 %v2140_v22 }
 0x229   : > { %2263 = vmatprep.subr.mxu1 %v3443_v53  ;;  %2179 = vmatprep.subr.mxu0 %v3443_v53 }
 0x22a   : > { %2264 = vmatpush1.msra.mxu1 %v3178_v51  ;;  %2180 = vmatpush1.msra.mxu0 %v2139_v5 }
 0x22b   : > { %2265 = vmatprep.subr.mxu1 %v3443_v53  ;;  %2181 = vmatprep.subr.mxu0 %v3443_v53 }
 0x22c   : > { %2266 = vmatpush1.msra.mxu1 %v3177_v60  ;;  %2182 = vmatpush1.msra.mxu0 %v2138_v59 }
 0x22d   : > { %2267 = vmatprep.subr.mxu1 %v3443_v53  ;;  %2183 = vmatprep.subr.mxu0 %v3443_v53 }
 0x22e   : > { %2268 = vmatpush1.msra.mxu1 %v3176_v57  ;;  %2184 = vmatpush1.msra.mxu0 %v2137_v8 }
 0x22f   : > { %2269 = vmatprep.subr.mxu1 %v3443_v53  ;;  %2185 = vmatprep.subr.mxu0 %v3443_v53 }
 0x230   : > { %2270 = vmatpush1.msra.mxu1 %v3175_v3  ;;  %2186 = vmatpush1.msra.mxu0 %v2136_v20  ;;  %v3219_v20 = vld [vmem:[%s5433_s5 + $0x218] sm:$0xff] }
 0x231   : > { %2271 = vmatprep.subr.mxu1 %v3443_v53  ;;  %2187 = vmatprep.subr.mxu0 %v3443_v53 }
 0x232   : > { %2272 = vmatpush1.msra.mxu1 %v3174_v19  ;;  %2188 = vmatpush1.msra.mxu0 %v2135_v27  ;;  %v3194_v27 = vld [vmem:[%s5433_s5 + $0x158] sm:$0xff] }
 0x233   : > { %2273 = vmatprep.subr.mxu1 %v3443_v53  ;;  %2217 = vmatprep.subr.mxu0 %v3443_v53 }
 0x234   : > { %2274 = vmatpush1.msra.mxu1 %v3173_v25  ;;  %2218 = vmatpush2.msra.mxu0 %v2152_v58  ;;  %v3211_v58 = vld [vmem:[%s5433_s5 + $0x1d8] sm:$0xff] }
 0x235   : > { %2275 = vmatprep.subr.mxu1 %v3443_v53  ;;  %2219 = vmatprep.subr.mxu0 %v3443_v53 }
 0x236   : > { %2276 = vmatpush1.msra.mxu1 %v3172_v62  ;;  %2220 = vmatpush2.msra.mxu0 %v2151_v41 }
 0x237   : > { %2277 = vmatprep.subr.mxu1 %v3443_v53  ;;  %2348 = vmatprep.subr.mxu0 %v3443_v53 }
 0x238   : > { %2278 = vmatpush1.msra.mxu1 %v3171_v37 }
 0x239   : > { %2279 = vmatprep.subr.mxu1 %v3443_v53 }
 0x23a   : > { %2280 = vmatpush1.msra.mxu1 %v3170_v21  ;;  %v3198_v21 = vld [vmem:[%s5433_s5 + $0x178] sm:$0xff] }
 0x23b   : > { %2281 = vmatprep.subr.mxu1 %v3443_v53 }
 0x23c   : > { %2282 = vmatpush1.msra.mxu1 %v3169_v1  ;;  %v3214_v1 = vld [vmem:[%s5433_s5 + $0x1f0] sm:$0xff] }
 0x23d   : > { %2283 = vmatprep.subr.mxu1 %v3443_v53 }
 0x23e   : > { %2284 = vmatpush1.msra.mxu1 %v3168_v63  ;;  %v3190_v63 = vld [vmem:[%s5433_s5 + $0x138] sm:$0xff] }
 0x23f   : > { %2313 = vmatprep.subr.mxu1 %v3443_v53 }
 0x240   : > { %2314 = vmatpush2.msra.mxu1 %v3185_v42  ;;  %v3187_v42 = vld [vmem:[%s5433_s5 + $0x120] sm:$0xff] }
 0x241   : > { %2315 = vmatprep.subr.mxu1 %v3443_v53 }
 0x242   : > { %2316 = vmatpush2.msra.mxu1 %v3184_v18  ;;  %v3203_v18 = vld [vmem:[%s5433_s5 + $0x1a0] sm:$0xff] }
 0x243   : > { %2443 = vmatprep.subr.mxu1 %v3443_v53 }
 0x282   : > { %v1614_v26 = vpop.f32.mrf.mxu0 }
 0x284   : > { %v1616_v13 = vpop.f32.mrf.mxu0 }
 0x286   : > { %v1620_v0 = vpop.f32.mrf.mxu0 }
 0x288   : > { %v1622_v9 = vpop.f32.mrf.mxu0 }
 0x28a   : > { %v1525_v10 = vpop.f32.mrf.mxu1 }
 0x28b   : > { %v1615_v61 = vadd.f32 %v1614_v26, %v1525_v10  ;;  %v3202_v26 = vld [vmem:[%s5433_s5 + $0x198] sm:$0xff] }
 0x28c   : > { %v1527_v55 = vpop.f32.mrf.mxu1 }
 0x28d   : > { %v1617_v34 = vadd.f32 %v1616_v13, %v1527_v55 }
 0x28f   : > { %v1531_v44 = vpop.f32.mrf.mxu1 }
 0x290   : > { %v1621_v38 = vadd.f32 %v1620_v0, %v1531_v44  ;;  %v3201_v0 = vld [vmem:[%s5433_s5 + $0x190] sm:$0xff] }
 0x291   : > { %v1533_v56 = vpop.f32.mrf.mxu1 }
 0x292   : > { %v1623_v29 = vadd.f32 %v1622_v9, %v1533_v56 }
 0x2af   : > { %v1910_v12 = vpop.f32.mrf.mxu0 }
 0x2b1   : > { %v1912_v23 = vpop.f32.mrf.mxu0 }
 0x2b3   : > { %v1916_v32 = vpop.f32.mrf.mxu0 }
 0x2b5   : > { %v1760_v17 = vpop.f32.mrf.mxu1  ;;  %v1918_v47 = vpop.f32.mrf.mxu0 }
 0x2b6   : > { %v1771_v4 = vadd.f32 %v1760_v17, %v1615_v61  ;;  %v3221_v17 = vld [vmem:[%s5433_s5 + $0x228] sm:$0xff]  ;;  %v3199_v61 = vld [vmem:[%s5433_s5 + $0x180] sm:$0xff] }
 0x2b7   : > { %v1762_v46 = vpop.f32.mrf.mxu1 }
 0x2b8   : > { %v1772_v39 = vadd.f32 %v1762_v46, %v1617_v34  ;;  %v1921_v31 = vadd.f32 %v1910_v12, %v1771_v4  ;;  %v3200_v46 = vld [vmem:[%s5433_s5 + $0x188] sm:$0xff]  ;;  %v3220_v12 = vld [vmem:[%s5433_s5 + $0x220] sm:$0xff]  ;;  %v3197_v34 = vld [vmem:[%s5433_s5 + $0x170] sm:$0xff] }
 0x2b9   : > { %v1766_v14 = vpop.f32.mrf.mxu1  ;;  %v3217_v4 = vld [vmem:[%s5433_s5 + $0x208] sm:$0xff] }
 0x2ba   : > { %v1773_v30 = vadd.f32 %v1766_v14, %v1621_v38  ;;  %v1922_v40 = vadd.f32 %v1912_v23, %v1772_v39  ;;  %v3218_v14 = vld [vmem:[%s5433_s5 + $0x210] sm:$0xff]  ;;  %v3216_v23 = vld [vmem:[%s5433_s5 + $0x200] sm:$0xff]  ;;  %v3215_v39 = vld [vmem:[%s5433_s5 + $0x1f8] sm:$0xff] }
 0x2bb   : > { %v1768_v6 = vpop.f32.mrf.mxu1  ;;  %v3195_v38 = vld [vmem:[%s5433_s5 + $0x160] sm:$0xff] }
 0x2bc   : > { %v1774_v35 = vadd.f32 %v1768_v6, %v1623_v29  ;;  %v1923_v16 = vadd.f32 %v1916_v32, %v1773_v30  ;;  %v3193_v6 = vld [vmem:[%s5433_s5 + $0x150] sm:$0xff]  ;;  %v3192_v29 = vld [vmem:[%s5433_s5 + $0x148] sm:$0xff]  ;;  %v3212_v30 = vld [vmem:[%s5433_s5 + $0x1e0] sm:$0xff] }
 0x2bd   : > { %v3210_v32 = vld [vmem:[%s5433_s5 + $0x1d0] sm:$0xff] }
 0x2be   : > { %v1924_v54 = vadd.f32 %v1918_v47, %v1774_v35  ;;  %v3223_v47 = vld [vmem:[%s5433_s5 + $0x238] sm:$0xff] }
 0x2df   : > { %v2060_v33 = vpop.f32.mrf.mxu1 }
 0x2e0   : > { %v2071_v36 = vadd.f32 %v2060_v33, %v1921_v31  ;;  %v3191_v31 = vld [vmem:[%s5433_s5 + $0x140] sm:$0xff]  ;;  %v3189_v33 = vld [vmem:[%s5433_s5 + $0x130] sm:$0xff] }
 0x2e1   : > { %v2062_v43 = vpop.f32.mrf.mxu1 }
 0x2e2   : > { %v2087_v7 = vadd.f32 %v2080_v28, %v2071_v36  ;;  %v2072_v24 = vadd.f32 %v2062_v43, %v1922_v40  ;;  %v3188_v36 = vld [vmem:[%s5433_s5 + $0x128] sm:$0xff]  ;;  %v3208_v40 = vld [vmem:[%s5433_s5 + $0x1c0] sm:$0xff]  ;;  %v3207_v43 = vld [vmem:[%s5433_s5 + $0x1b8] sm:$0xff] }
 0x2e3   : > { %v2066_v48 = vpop.f32.mrf.mxu1 }
 0x2e4   : > { %v2091_v49 = vmax.f32 %v2087_v7, 0.0  ;;  %v2088_v50 = vadd.f32 %v2084_v15, %v2072_v24  ;;  %v2073_v51 = vadd.f32 %v2066_v48, %v1923_v16  ;;  %v3204_v7 = vld [vmem:[%s5433_s5 + $0x1a8] sm:$0xff]  ;;  %v3206_v24 = vld [vmem:[%s5433_s5 + $0x1b0] sm:$0xff] }
 0x2e5   : > { %v2068_v60 = vpop.f32.mrf.mxu1 }
 0x2e6   : > { %v2092_v52 = vmax.f32 %v2088_v50, 0.0  ;;  %v5027_v57 = vadd.f32 %v2080_v28, %v2073_v51  ;;  %v2074_v2 = vadd.f32 %v2068_v60, %v1924_v54  ;;  %2099 = vrot.lane.b32.xlu0 %v2091_v49, %s3446_s29  ;;  %v3213_v28 = vld [vmem:[%s5433_s5 + $0x1e8] sm:$0xff]  ;;  %v3240_v50 = vld [vmem:[%s5433_s5 + $0x2b8] sm:$0xff]  ;;  %v3239_v60 = vld [vmem:[%s5433_s5 + $0x2b0] sm:$0xff] }
 0x2e8   : > { %v2093_v3 = vmax.f32 %v5027_v57, 0.0  ;;  %v5030_v11 = vadd.f32 %v2084_v15, %v2074_v2  ;;  %2101 = vrot.lane.b32.xlu1 %v2092_v52, %s3446_s29  ;;  %v3209_v15 = vld [vmem:[%s5433_s5 + $0x1c8] sm:$0xff]  ;;  %v3237_v2 = vld [vmem:[%s5433_s5 + $0x2a0] sm:$0xff] }
 0x2e9   : > { %v3242_v57 = vld [vmem:[%s5433_s5 + $0x2c8] sm:$0xff] }
 0x2ea   : > { %v2094_v19 = vmax.f32 %v5030_v11, 0.0  ;;  %2103 = vrot.lane.b32.xlu0 %v2093_v3, %s3446_s29  ;;  %v3236_v11 = vld [vmem:[%s5433_s5 + $0x298] sm:$0xff] }
 0x2ec   : > { %2105 = vrot.lane.b32.xlu1 %v2094_v19, %s3446_s29  ;;  %s3247_s29 = sshll.u32 %s3530_s21, 4  ;;  %s3385_s21 = sshll.u32 %s3448_s26, 4  ;;  %s3386_s21 = int_to_ptr.vmem [resolvable:$false] %s3385_s21 }
 0x2ed   : > { %s5393_s12 = scalar_lea.hbm %s5439_s11, %s3247_s29  ;;  %s3387_s19 = scalar_lea.vmem %s3386_s21, 32 }
 0x2ee   : > { %p3388_p0 = scmp.lt.s32.totalorder %s2803_s25, %s3386_s21  ;;  %p3389_p1 = scmp.lt.s32.totalorder %s3387_s19, %s3381_s14 }
 0x2f0   : > { %p3390_p2 = por %p3389_p1, %p3388_p0 }
 0x2f2   : > { %p3391_p3 = pnand %p3390_p2, %p3384_p13 }
 0x358   : > { %v2100_v22 = vpop.permute.xlu0 %2099 }
 0x35a   : > { %v2102_v25 = vpop.permute.xlu1 %2101 }
 0x35b   : > { %v2108_v5 = vsel %vm2107_vm9, %v2100_v22, %v2102_v25  ;;  %v2115_v62 = vmax.f32 %v2092_v52, %v2102_v25  ;;  %v3238_v52 = vld [vmem:[%s5433_s5 + $0x2a8] sm:$0xff]  ;;  %v3233_v25 = vld [vmem:[%s5433_s5 + $0x280] sm:$0xff] }
 0x35c   : > { %v2114_v59 = vmax.f32 %v2091_v49, %v2108_v5  ;;  %v3222_v49 = vld [vmem:[%s5433_s5 + $0x230] sm:$0xff]  ;;  %v3234_v22 = vld [vmem:[%s5433_s5 + $0x288] sm:$0xff]  ;;  %v3232_v5 = vld [vmem:[%s5433_s5 + $0x278] sm:$0xff] }
 0x35d   : > { %v2121_v37 = vrot.slane %v2115_v62, 1 }
 0x35e   : > { %v2120_v8 = vrot.slane %v2114_v59, 1  ;;  %v5150_v35 = vpop.permute.xlu1 %2105 }
 0x35f   : > { %v2125_v10 = vmax.f32 %v2115_v62, %v2121_v37  ;;  %v2117_v41 = vmax.f32 %v2094_v19, %v5150_v35  ;;  %v3235_v19 = vld [vmem:[%s5433_s5 + $0x290] sm:$0xff]  ;;  %v3229_v37 = vld [vmem:[%s5433_s5 + $0x260] sm:$0xff] }
 0x360   : > { %v5038_v55 = vmax.f32 %v2114_v59, %v2120_v8  ;;  %v3231_v62 = vld [vmem:[%s5433_s5 + $0x270] sm:$0xff]  ;;  %v3230_v59 = vld [vmem:[%s5433_s5 + $0x268] sm:$0xff]  ;;  %v2104_v8 = vpop.permute.xlu0 %2103 }
 0x361   : > { %3167 = vmatprep.mubr.msk.f32.mxu0 %vm2153_vm10, %v2125_v10  ;;  %v2249_v44 = vrot.slane %v2125_v10, 2  ;;  %v2344_v13 = vrot.slane %v2125_v10, 4  ;;  %v2439_v9 = vrot.slane %v2125_v10, 6  ;;  %v2129_v16 = vrot.slane %v2117_v41, 1  ;;  %v3228_v10 = vld [vmem:[%s5433_s5 + $0x258] sm:$0xff] }
 0x362   : > { %2222 = vmatmul.mubr.f32.vlgmr.msra.gmra.mxu0 %v5038_v55  ;;  %v2248_v56 = vrot.slane %v5038_v55, 2  ;;  %v2343_v48 = vrot.slane %v5038_v55, 4  ;;  %v2438_v54 = vrot.slane %v5038_v55, 6  ;;  %v2109_v55 = vsel %vm2107_vm9, %v2104_v8, %v5150_v35 }
 0x363   : > { %2349 = vmatpush1.msra.mxu0 %v3202_v26  ;;  %3186 = vmatprep.mubr.msk.f32.mxu1 %vm2153_vm10, %v2249_v44  ;;  %v2133_v51 = vmax.f32 %v2117_v41, %v2129_v16  ;;  %v3227_v26 = vld [vmem:[%s5433_s5 + $0x250] sm:$0xff]  ;;  %v2116_v44 = vmax.f32 %v2093_v3, %v2109_v55  ;;  %v3241_v3 = vld [vmem:[%s5433_s5 + $0x2c0] sm:$0xff] }
 0x364   : > { %2350 = vmatprep.subr.mxu0 %v3443_v53  ;;  %3205 = vmatprep.mubr.msk.f32.mxu0 %vm2153_vm10, %v2344_v13  ;;  %v3226_v13 = vld [vmem:[%s5433_s5 + $0x248] sm:$0xff] }
 0x365   : > { %2318 = vmatmul.mubr.f32.vlgmr.msra.gmra.mxu1 %v2248_v56  ;;  %2351 = vmatpush1.msra.mxu0 %v3201_v0  ;;  %v3225_v56 = vld [vmem:[%s5433_s5 + $0x240] sm:$0xff]  ;;  %v2128_v0 = vrot.slane %v2116_v44, 1 }
 0x366   : > { %2444 = vmatpush1.msra.mxu1 %v3221_v17  ;;  %2352 = vmatprep.subr.mxu0 %v3443_v53 }
 0x367   : > { %2445 = vmatprep.subr.mxu1 %v3443_v53  ;;  %3224 = vmatprep.mubr.msk.f32.mxu1 %vm2153_vm10, %v2439_v9  ;;  %v2132_v17 = vmax.f32 %v2116_v44, %v2128_v0  ;;  %v2622_v9 = vld [vmem:[%s5435_s7 + $0x70] sm:$0xff] }
 0x368   : > { %2353 = vmatpush1.msra.mxu0 %v3200_v46  ;;  %2446 = vmatpush1.msra.mxu1 %v3220_v12  ;;  %v2621_v46 = vld [vmem:[%s5435_s7 + $0x68] sm:$0xff]  ;;  %v2620_v12 = vld [vmem:[%s5435_s7 + $0x60] sm:$0xff] }
 0x369   : > { %2354 = vmatprep.subr.mxu0 %v3443_v53  ;;  %2447 = vmatprep.subr.mxu1 %v3443_v53 }
 0x36a   : > { %2355 = vmatpush1.msra.mxu0 %v3199_v61  ;;  %2448 = vmatpush1.msra.mxu1 %v3219_v20  ;;  %v2619_v61 = vld [vmem:[%s5435_s7 + $0x58] sm:$0xff]  ;;  %v2618_v20 = vld [vmem:[%s5435_s7 + $0x50] sm:$0xff] }
 0x36b   : > { %2356 = vmatprep.subr.mxu0 %v3443_v53  ;;  %2449 = vmatprep.subr.mxu1 %v3443_v53 }
 0x36c   : > { %2357 = vmatpush1.msra.mxu0 %v3198_v21  ;;  %2450 = vmatpush1.msra.mxu1 %v3218_v14  ;;  %v2617_v21 = vld [vmem:[%s5435_s7 + $0x48] sm:$0xff]  ;;  %v2616_v14 = vld [vmem:[%s5435_s7 + $0x40] sm:$0xff] }
 0x36d   : > { %2358 = vmatprep.subr.mxu0 %v3443_v53  ;;  %2451 = vmatprep.subr.mxu1 %v3443_v53 }
 0x36e   : > { %2359 = vmatpush1.msra.mxu0 %v3197_v34  ;;  %2452 = vmatpush1.msra.mxu1 %v3217_v4  ;;  %v2615_v34 = vld [vmem:[%s5435_s7 + $0x38] sm:$0xff]  ;;  %v2614_v4 = vld [vmem:[%s5435_s7 + $0x30] sm:$0xff] }
 0x36f   : > { %2360 = vmatprep.subr.mxu0 %v3443_v53  ;;  %2453 = vmatprep.subr.mxu1 %v3443_v53 }
 0x370   : > { %2361 = vmatpush1.msra.mxu0 %v3196_v45  ;;  %2454 = vmatpush1.msra.mxu1 %v3216_v23  ;;  %v2613_v45 = vld [vmem:[%s5435_s7 + $0x28] sm:$0xff]  ;;  %v2612_v23 = vld [vmem:[%s5435_s7 + $0x20] sm:$0xff] }
 0x371   : > { %2362 = vmatprep.subr.mxu0 %v3443_v53  ;;  %2455 = vmatprep.subr.mxu1 %v3443_v53 }
 0x372   : > { %2363 = vmatpush1.msra.mxu0 %v3195_v38  ;;  %2456 = vmatpush1.msra.mxu1 %v3215_v39  ;;  %v2611_v38 = vld [vmem:[%s5435_s7 + $0x18] sm:$0xff]  ;;  %v2610_v39 = vld [vmem:[%s5435_s7 + $0x10] sm:$0xff] }
 0x373   : > { %2364 = vmatprep.subr.mxu0 %v3443_v53  ;;  %2457 = vmatprep.subr.mxu1 %v3443_v53 }
 0x374   : > { %2365 = vmatpush1.msra.mxu0 %v3194_v27  ;;  %2458 = vmatpush1.msra.mxu1 %v3214_v1  ;;  %v2609_v27 = vld [vmem:[%s5435_s7 + $0x8] sm:$0xff]  ;;  %v2608_v1 = vld [vmem:[%s5435_s7] sm:$0xff] }
 0x375   : > { %2366 = vmatprep.subr.mxu0 %v3443_v53  ;;  %2459 = vmatprep.subr.mxu1 %v3443_v53 }
 0x376   : > { %2367 = vmatpush1.msra.mxu0 %v3193_v6  ;;  %2460 = vmatpush1.msra.mxu1 %v3213_v28  ;;  %v2709_v6 = vld [vmem:[%s5437_s9 + $0x50] sm:$0xf]  ;;  %v2708_v28 = vld [vmem:[%s5437_s9 + $0x48] sm:$0xff] }
 0x377   : > { %2368 = vmatprep.subr.mxu0 %v3443_v53  ;;  %2461 = vmatprep.subr.mxu1 %v3443_v53 }
 0x378   : > { %2369 = vmatpush1.msra.mxu0 %v3192_v29  ;;  %2462 = vmatpush1.msra.mxu1 %v3212_v30  ;;  %v2707_v29 = vld [vmem:[%s5437_s9 + $0x40] sm:$0xff]  ;;  %v2706_v30 = vld [vmem:[%s5437_s9 + $0x38] sm:$0xff] }
 0x379   : > { %2370 = vmatprep.subr.mxu0 %v3443_v53  ;;  %2463 = vmatprep.subr.mxu1 %v3443_v53 }
 0x37a   : > { %2371 = vmatpush1.msra.mxu0 %v3191_v31  ;;  %2464 = vmatpush1.msra.mxu1 %v3211_v58  ;;  %v2705_v31 = vld [vmem:[%s5437_s9 + $0x30] sm:$0xff]  ;;  %v2704_v58 = vld [vmem:[%s5437_s9 + $0x28] sm:$0xff] }
 0x37b   : > { %2372 = vmatprep.subr.mxu0 %v3443_v53  ;;  %2465 = vmatprep.subr.mxu1 %v3443_v53 }
 0x37c   : > { %2373 = vmatpush1.msra.mxu0 %v3190_v63  ;;  %2466 = vmatpush1.msra.mxu1 %v3210_v32  ;;  %v2703_v63 = vld [vmem:[%s5437_s9 + $0x20] sm:$0xff]  ;;  %v2702_v32 = vld [vmem:[%s5437_s9 + $0x18] sm:$0xff] }
 0x37d   : > { %2374 = vmatprep.subr.mxu0 %v3443_v53  ;;  %2467 = vmatprep.subr.mxu1 %v3443_v53 }
 0x37e   : > { %2375 = vmatpush1.msra.mxu0 %v3189_v33  ;;  %2468 = vmatpush1.msra.mxu1 %v3209_v15  ;;  %v2134_v33 = vld [vmem:[%s5434_s6] sm:$0x1] }
 0x37f   : > { %2376 = vmatprep.subr.mxu0 %v3443_v53  ;;  %2469 = vmatprep.subr.mxu1 %v3443_v53 }
 0x380   : > { %2377 = vmatpush1.msra.mxu0 %v3188_v36  ;;  %2470 = vmatpush1.msra.mxu1 %v3208_v40 }
 0x381   : > { %2378 = vmatprep.subr.mxu0 %v3443_v53  ;;  %2471 = vmatprep.subr.mxu1 %v3443_v53 }
 0x382   : > { %2379 = vmatpush1.msra.mxu0 %v3187_v42  ;;  %2472 = vmatpush1.msra.mxu1 %v3207_v43 }
 0x383   : > { %2408 = vmatprep.subr.mxu0 %v3443_v53  ;;  %2473 = vmatprep.subr.mxu1 %v3443_v53 }
 0x384   : > { %2409 = vmatpush2.msra.mxu0 %v3204_v7  ;;  %2474 = vmatpush1.msra.mxu1 %v3206_v24 }
 0x385   : > { %2410 = vmatprep.subr.mxu0 %v3443_v53  ;;  %2503 = vmatprep.subr.mxu1 %v3443_v53 }
 0x386   : > { %2411 = vmatpush2.msra.mxu0 %v3203_v18  ;;  %2504 = vmatpush2.msra.mxu1 %v3223_v47 }
 0x387   : > { %2413 = vmatmul.mubr.f32.vlgmr.msra.gmra.mxu0 %v2343_v48  ;;  %2505 = vmatprep.subr.mxu1 %v3443_v53 }
 0x388   : > { %2536 = vmatprep.subr.mxu0 %v3443_v53  ;;  %2506 = vmatpush2.msra.mxu1 %v3222_v49 }
 0x389   : > { %2537 = vmatpush1.msra.mxu0 %v3240_v50  ;;  %3243 = vmatprep.mubr.msk.f32.mxu0 %vm2153_vm10, %v2133_v51 }
 0x38a   : > { %2508 = vmatmul.mubr.f32.vlgmr.msra.gmra.mxu1 %v2438_v54  ;;  %2538 = vmatprep.subr.mxu0 %v3443_v53  ;;  %v2701_v54 = vld [vmem:[%s5437_s9 + $0x10] sm:$0xff] }
 0x38b   : > { %2539 = vmatpush1.msra.mxu0 %v3239_v60  ;;  %3279 = vmatprep.subr.mxu1 %v3443_v53  ;;  %v2700_v60 = vld [vmem:[%s5437_s9 + $0x8] sm:$0xff] }
 0x38c   : > { %2540 = vmatprep.subr.mxu0 %v3443_v53  ;;  %3280 = vmatpush3.msra.mxu1 %v2622_v9 }
 0x38d   : > { %2541 = vmatpush1.msra.mxu0 %v3238_v52  ;;  %3281 = vmatprep.subr.mxu1 %v3443_v53  ;;  %v2699_v52 = vld [vmem:[%s5437_s9] sm:$0xff] }
 0x38e   : > { %2542 = vmatprep.subr.mxu0 %v3443_v53  ;;  %3282 = vmatpush3.msra.mxu1 %v2621_v46 }
 0x38f   : > { %2543 = vmatpush1.msra.mxu0 %v3237_v2  ;;  %3283 = vmatprep.subr.mxu1 %v3443_v53  ;;  %v2623_v2 = vld [vmem:[%s5436_s8] sm:$0x1] }
 0x390   : > { %2544 = vmatprep.subr.mxu0 %v3443_v53  ;;  %3284 = vmatpush3.msra.mxu1 %v2620_v12 }
 0x391   : > { %2545 = vmatpush1.msra.mxu0 %v3236_v11  ;;  %3285 = vmatprep.subr.mxu1 %v3443_v53 }
 0x392   : > { %2546 = vmatprep.subr.mxu0 %v3443_v53  ;;  %3286 = vmatpush3.msra.mxu1 %v2619_v61 }
 0x393   : > { %2547 = vmatpush1.msra.mxu0 %v3235_v19  ;;  %3287 = vmatprep.subr.mxu1 %v3443_v53 }
 0x394   : > { %2548 = vmatprep.subr.mxu0 %v3443_v53  ;;  %3288 = vmatpush3.msra.mxu1 %v2618_v20 }
 0x395   : > { %2549 = vmatpush1.msra.mxu0 %v3234_v22  ;;  %3289 = vmatprep.subr.mxu1 %v3443_v53 }
 0x396   : > { %2550 = vmatprep.subr.mxu0 %v3443_v53  ;;  %3290 = vmatpush3.msra.mxu1 %v2617_v21 }
 0x397   : > { %2551 = vmatpush1.msra.mxu0 %v3233_v25  ;;  %3291 = vmatprep.subr.mxu1 %v3443_v53 }
 0x398   : > { %2552 = vmatprep.subr.mxu0 %v3443_v53  ;;  %3292 = vmatpush3.msra.mxu1 %v2616_v14 }
 0x399   : > { %2553 = vmatpush1.msra.mxu0 %v3232_v5  ;;  %3293 = vmatprep.subr.mxu1 %v3443_v53 }
 0x39a   : > { %2554 = vmatprep.subr.mxu0 %v3443_v53  ;;  %3294 = vmatpush3.msra.mxu1 %v2615_v34 }
 0x39b   : > { %2555 = vmatpush1.msra.mxu0 %v3231_v62  ;;  %3295 = vmatprep.subr.mxu1 %v3443_v53 }
 0x39c   : > { %2556 = vmatprep.subr.mxu0 %v3443_v53  ;;  %3296 = vmatpush3.msra.mxu1 %v2614_v4 }
 0x39d   : > { %2557 = vmatpush1.msra.mxu0 %v3230_v59  ;;  %3297 = vmatprep.subr.mxu1 %v3443_v53 }
 0x39e   : > { %2558 = vmatprep.subr.mxu0 %v3443_v53  ;;  %3298 = vmatpush3.msra.mxu1 %v2613_v45 }
 0x39f   : > { %2559 = vmatpush1.msra.mxu0 %v3229_v37  ;;  %3299 = vmatprep.subr.mxu1 %v3443_v53 }
 0x3a0   : > { %2560 = vmatprep.subr.mxu0 %v3443_v53  ;;  %3300 = vmatpush3.msra.mxu1 %v2612_v23 }
 0x3a1   : > { %2561 = vmatpush1.msra.mxu0 %v3228_v10  ;;  %3301 = vmatprep.subr.mxu1 %v3443_v53 }
 0x3a2   : > { %2562 = vmatprep.subr.mxu0 %v3443_v53  ;;  %3302 = vmatpush3.msra.mxu1 %v2611_v38 }
 0x3a3   : > { %2563 = vmatpush1.msra.mxu0 %v3227_v26  ;;  %3303 = vmatprep.subr.mxu1 %v3443_v53 }
 0x3a4   : > { %2564 = vmatprep.subr.mxu0 %v3443_v53  ;;  %3304 = vmatpush3.msra.mxu1 %v2610_v39 }
 0x3a5   : > { %2565 = vmatpush1.msra.mxu0 %v3226_v13  ;;  %3305 = vmatprep.subr.mxu1 %v3443_v53 }
 0x3a6   : > { %2566 = vmatprep.subr.mxu0 %v3443_v53  ;;  %3306 = vmatpush3.msra.mxu1 %v2609_v27 }
 0x3a7   : > { %2567 = vmatpush1.msra.mxu0 %v3225_v56  ;;  %3307 = vmatprep.subr.mxu1 %v3443_v53 }
 0x3a8   : > { %2596 = vmatprep.subr.mxu0 %v3443_v53  ;;  %3308 = vmatpush3.msra.mxu1 %v2608_v1 }
 0x3a9   : > { %2597 = vmatpush2.msra.mxu0 %v3242_v57  ;;  %3309 = vmatprep.mubr.msk.f32.mxu1 %vm3447_vm11, %v3443_v53 }
 0x3aa   : > { %2598 = vmatprep.subr.mxu0 %v3443_v53 }
 0x3ab   : > { %2599 = vmatpush2.msra.mxu0 %v3241_v3 }
 0x3ac   : > { %2601 = vmatmul.mubr.f32.vlgmr.msra.gmra.mxu0 %v2132_v17  ;;  %3312 = vmatprep.subr.mxu0 %v3443_v53 }
 0x3ad   : > { %3334 = vmatprep.mubr.msk.f32.mxu0 %vm3447_vm11, %v3443_v53  ;;  %3313 = vmatpush3.msk.msra.mxu0 %vm945_vm4, %v2709_v6 }
 0x3ae   : > { %3314 = vmatprep.subr.mxu0 %v3443_v53 }
 0x3af   : > { %3315 = vmatpush3.msra.mxu0 %v2708_v28 }
 0x3b0   : > { %3316 = vmatprep.subr.mxu0 %v3443_v53 }
 0x3b1   : > { %3317 = vmatpush3.msra.mxu0 %v2707_v29 }
 0x3b2   : > { %3318 = vmatprep.subr.mxu0 %v3443_v53 }
 0x3b3   : > { %3319 = vmatpush3.msra.mxu0 %v2706_v30 }
 0x3b4   : > { %3320 = vmatprep.subr.mxu0 %v3443_v53 }
 0x3b5   : > { %3321 = vmatpush3.msra.mxu0 %v2705_v31 }
 0x3b6   : > { %3322 = vmatprep.subr.mxu0 %v3443_v53 }
 0x3b7   : > { %3323 = vmatpush3.msra.mxu0 %v2704_v58 }
 0x3b8   : > { %3324 = vmatprep.subr.mxu0 %v3443_v53 }
 0x3b9   : > { %3325 = vmatpush3.msra.mxu0 %v2703_v63 }
 0x3ba   : > { %3326 = vmatprep.subr.mxu0 %v3443_v53 }
 0x3bb   : > { %3327 = vmatpush3.msra.mxu0 %v2702_v32 }
 0x3bc   : > { %3328 = vmatprep.subr.mxu0 %v3443_v53 }
 0x3bd   : > { %3329 = vmatpush3.msra.mxu0 %v2701_v54 }
 0x3be   : > { %3330 = vmatprep.subr.mxu0 %v3443_v53 }
 0x3bf   : > { %3331 = vmatpush3.msra.mxu0 %v2700_v60 }
 0x3c0   : > { %3332 = vmatprep.subr.mxu0 %v3443_v53  ;;  %v2710_v53 = vld [vmem:[%s5438_s10] sm:$0x1] }
 0x3c1   : > { %3333 = vmatpush3.msra.mxu0 %v2699_v52 }
 0x422   : > { %v2223_v15 = vpop.f32.mrf.mxu0 }
 0x423   : > { %v2227_v35 = vadd.f32 %v2223_v15, %v2134_v33 }
 0x424   : > { %v2225_v36 = vpop.f32.mrf.mxu0 }
 0x425   : > { %v2319_v40 = vpop.f32.mrf.mxu1 }
 0x426   : > { %v2323_v41 = vadd.f32 %v2319_v40, %v2227_v35 }
 0x427   : > { %v2321_v42 = vpop.f32.mrf.mxu1 }
 0x447   : > { %v2414_v43 = vpop.f32.mrf.mxu0 }
 0x448   : > { %v2418_v18 = vadd.f32 %v2414_v43, %v2323_v41 }
 0x449   : > { %v2416_v7 = vpop.f32.mrf.mxu0 }
 0x44a   : > { %v2509_v24 = vpop.f32.mrf.mxu1 }
 0x44b   : > { %v2513_v47 = vadd.f32 %v2509_v24, %v2418_v18 }
 0x44c   : > { %v2511_v16 = vpop.f32.mrf.mxu1 }
 0x46c   : > { %v2602_v48 = vpop.f32.mrf.mxu0 }
 0x46d   : > { %v2606_v49 = vadd.f32 %v2602_v48, %v2513_v47 }
 0x46e   : > { %v2604_v50 = vpop.f32.mrf.mxu0 }
 0x46f   : > { %v2607_v51 = vmax.f32 %v2606_v49, 0.0 }
 0x471   : > { %3310 = vmatmul.mubr.msk.f32.vlgmr.msra.gmra.mxu1 %vm2624_vm12, %v2607_v51 }
 0x531   : > { %v2694_v11 = vpop.f32.mrf.mxu1 }
 0x532   : > { %v2695_v19 = vadd.f32 %v2694_v11, %v2623_v2 }
 0x533   : > { %v3311_v22 = vpop.f32.mrf.mxu1 }
 0x534   : > { %v2698_v25 = vmax.f32 %v2695_v19, 0.0 }
 0x536   : > { %3335 = vmatmul.mubr.msk.f32.vlgmr.msra.gmra.mxu0 %vm2711_vm13, %v2698_v25 }
 0x5f6   : > { %v2784_v5 = vpop.f32.mrf.mxu0 }
 0x5f7   : > { %v2785_v62 = vadd.f32 %v2784_v5, %v2710_v53 }
 0x5f8   : > { %v3336_v59 = vpop.f32.mrf.mxu0 }
 0x5f9   : > { %2788 = vst [vmem:[%s378_s24] sm:$0x1] %v2785_v62 }
 0x5fa   : > { %3394 = shalt.err (!%p3391_p3)
}
 0x5fb   : > { %s3395_s22 = scalar_lea.hbm %s5393_s12, 16  ;;  %s3399_s24 = scalar_lea.hbm %s5439_s11, 32 }
 0x5fc   : > { %p3396_p4 = scmp.ne.s32.totalorder %s5393_s12, %s3395_s22  ;;  %p3400_p9 = scmp.lt.s32.totalorder %s5393_s12, %s5439_s11 }
 0x5fd   : > { %p3401_p10 = scmp.lt.s32.totalorder %s3399_s24, %s3395_s22 }
 0x5fe   : > { %p3397_p7 = pnand %p3396_p4, %p3547_p5 }
 0x5ff   : > { %p3402_p11 = por %p3401_p10, %p3400_p9 }
 0x600   : > { %p3398_p8 = pneg %p3397_p7 }
 0x602   : > { %p3403_p12 = pnand %p3402_p11, %p3398_p8 }
 0x604   : > { %3406 = shalt.err (!%p3403_p12)
}
 0x605   : > { %3337 = dma.vmem_to_hbm [thread:$0]  (%p3547_p5), %s2803_s25, 16, %s5393_s12, %s2790_s13  }
 0x606 PF: > { %p3343_p13 = scmp.ge.s32.totalorder %s3441_s20, 2  ;;  %s2814_s14 = sand.u32 1, %s3429_s17  }
 0x607   : > { %s2815_s26 = scalar_lea.sflag [#allocation4], %s2814_s14 }
 0x608   : > { %p3340_p0 = pnand %p3343_p13, %p3551_p6 }
 0x60a   : > { %p3341_p1 = pneg %p3340_p0 }
 0x60c   : > { %3424 = dma.done.wait (%p3341_p1), %s2815_s26, 16  }
 0x60d   : > { %3426 = vsyncadd (%p3341_p1), %s2815_s26, 4294967280  ;;  %s5447_s21 = sld [smem:[#allocation6_spill]]  ;;  %p21_p2 = scmp.ge.s32.totalorder %s3534_s23, 4  }
 0x60e   : > { %s5448_s19 = sld [smem:[#allocation7_spill]]  ;;  %s5449_s17 = smov %s3433_s18 }
 0x60f   : > { %s5451_s20 = smov %s3534_s23  ;;  %23 = sbr.rel (!%p21_p2) target bundleno = 3 (0x3), region = 124 }
 0x613   : > { %s5450_s18 = smov %s5447_s21 }
 0x614   :  { %2819 = vsyncpa [#allocation4], 1 }
 0x615   :  { %2821 = vsyncpa [#allocation4 + $0x1], 1 }

</bundles_post_ra>
